<compile_context>
chip_gen: v7x
topology: tpu7x:2x2x1
jax: 0.10.0
libtpu: 0.0.40
codegen_flags: <defaults>
</compile_context>

<pallas_src>
import functools

import jax
import jax.numpy as jnp
from jax.experimental import pallas as pl
from jax.experimental.pallas import tpu as pltpu


def _round_up(x, m):
    return (x + m - 1) // m * m


# ----------------------------------------------------------------------------
# Pallas kernel: out = relu?( sum_t X[tap_t] @ W[t]  + bias  (+ residual) )
# ----------------------------------------------------------------------------
def _conv_bn_kernel(x_ref, w_ref, b_ref, *rest, taps, lout, has_residual, relu):
    if has_residual:
        res_ref, o_ref = rest
    else:
        (o_ref,) = rest

    acc = None
    for t, (ph, off) in enumerate(taps):
        # Static phase index + static row-offset window of the flattened image.
        xt = x_ref[ph, off:off + lout, :]
        part = jnp.dot(xt, w_ref[t], preferred_element_type=jnp.float32)
        acc = part if acc is None else acc + part

    acc = acc + b_ref[...]                     # folded BatchNorm bias
    if has_residual:
        acc = acc + res_ref[...].astype(jnp.float32)
    if relu:
        acc = jnp.maximum(acc, 0.0)
    o_ref[...] = acc.astype(o_ref.dtype)


# ----------------------------------------------------------------------------
# Wrapper: fused conv(kxk, stride, pad) + folded BN (+ residual) (+ ReLU)
# ----------------------------------------------------------------------------
def conv_bn_fused(x_nhwc, w_oihw, scale, bias, *, stride, pad, residual=None,
                  relu=False, out_dtype=jnp.bfloat16):
    """Returns (y, (Ho, Wo, Hq, Wq, Cp)); y has shape (N, Hq*Wq, Cp) and the
    valid conv output is y.reshape(N, Hq, Wq, Cp)[:, :Ho, :Wo, :Cout]."""
    N, H, W, C = x_nhwc.shape
    Cout, Cin, kh, kw = w_oihw.shape
    assert Cin == C, (Cin, C)
    s = stride
    Ho = (H + 2 * pad - kh) // s + 1
    Wo = (W + 2 * pad - kw) // s + 1

    # Pad spatially; round padded dims up to a multiple of the stride so the
    # stride-phase split is exact.
    Hp, Wp = H + 2 * pad, W + 2 * pad
    Hps, Wps = _round_up(Hp, s), _round_up(Wp, s)
    x = x_nhwc.astype(jnp.bfloat16)
    xp = jnp.pad(x, ((0, 0), (pad, pad + Hps - Hp), (pad, pad + Wps - Wp), (0, 0)))
    Hq, Wq = Hps // s, Wps // s

    # Stride-phase decomposition: xph[n, p*s+q, a, b, c] = xp[n, a*s+p, b*s+q, c]
    xph = xp.reshape(N, Hq, s, Wq, s, C).transpose(0, 2, 4, 1, 3, 5)
    xflat = xph.reshape(N, s * s, Hq * Wq, C)

    # Per-tap (phase index, row offset) into the flattened phase image.
    taps = []
    for di in range(kh):
        for dj in range(kw):
            taps.append(((di % s) * s + (dj % s), (di // s) * Wq + (dj // s)))
    Lout = Hq * Wq
    maxoff = max(off for _, off in taps)
    Lq = Lout + maxoff
    if maxoff:
        xflat = jnp.pad(xflat, ((0, 0), (0, 0), (0, maxoff), (0, 0)))

    # Weights: (Cout,Cin,kh,kw) -> (kh*kw, Cin, Cp), BN scale folded in,
    # Cout zero-padded to a lane-dense multiple of 128.
    Cp = _round_up(Cout, 128)
    wt = jnp.transpose(w_oihw, (2, 3, 1, 0)).reshape(kh * kw, Cin, Cout)
    wt = wt * scale.reshape(1, 1, Cout)
    wt = jnp.pad(wt, ((0, 0), (0, 0), (0, Cp - Cout))).astype(jnp.bfloat16)
    b2 = jnp.pad(bias, (0, Cp - Cout)).reshape(1, Cp).astype(jnp.float32)

    has_residual = residual is not None
    if has_residual:
        residual = residual.astype(jnp.bfloat16)
        assert residual.shape == (N, Lout, Cp), (residual.shape, (N, Lout, Cp))

    TC = 128                                  # lane-dense output tile
    grid = (N, Cp // TC)
    in_specs = [
        pl.BlockSpec((None, s * s, Lq, C), lambda n, j: (n, 0, 0, 0)),
        pl.BlockSpec((kh * kw, C, TC), lambda n, j: (0, 0, j)),
        pl.BlockSpec((1, TC), lambda n, j: (0, j)),
    ]
    args = [xflat, wt, b2]
    if has_residual:
        in_specs.append(pl.BlockSpec((None, Lout, TC), lambda n, j: (n, 0, j)))
        args.append(residual)

    kernel = functools.partial(_conv_bn_kernel, taps=tuple(taps), lout=Lout,
                               has_residual=has_residual, relu=relu)
    y = pl.pallas_call(
        kernel,
        out_shape=jax.ShapeDtypeStruct((N, Lout, Cp), out_dtype),
        grid=grid,
        in_specs=in_specs,
        out_specs=pl.BlockSpec((None, Lout, TC), lambda n, j: (n, 0, j)),
        compiler_params=pltpu.CompilerParams(
            dimension_semantics=("parallel", "parallel"),
            vmem_limit_bytes=32 * 1024 * 1024),
    )(*args)
    return y, (Ho, Wo, Hq, Wq, Cp)


# ----------------------------------------------------------------------------
# BasicBlock forward (Pallas) and numerics-matched pure-JAX reference
# ----------------------------------------------------------------------------
def fold_bn(bn, eps=1e-5):
    scale = bn["gamma"] / jnp.sqrt(bn["var"] + eps)
    bias = bn["beta"] - bn["mean"] * scale
    return scale, bias


def basic_block_forward(x_nchw, params, stride):
    N, Cin, H, W = x_nchw.shape
    planes = params["conv1_w"].shape[0]
    x = jnp.transpose(x_nchw, (0, 2, 3, 1))                    # NHWC

    # conv1 + bn1 + relu
    s1, b1 = fold_bn(params["bn1"])
    y1, (Ho, Wo, Hq1, Wq1, Cp) = conv_bn_fused(
        x, params["conv1_w"], s1, b1, stride=stride, pad=1, relu=True,
        out_dtype=jnp.bfloat16)
    h1 = y1.reshape(N, Hq1, Wq1, Cp)[:, :Ho, :Wo, :planes]     # bf16 image

    # shortcut path, laid out in conv2's padded-grid row space
    if params["shortcut"] is not None:
        ss, bs = fold_bn(params["shortcut"]["bn"])
        ys, (Hos, Wos, Hqs, Wqs, _) = conv_bn_fused(
            x, params["shortcut"]["conv_w"], ss, bs, stride=stride, pad=0,
            relu=False, out_dtype=jnp.bfloat16)
        assert (Hos, Wos) == (Ho, Wo)
        res_img = ys.reshape(N, Hqs, Wqs, Cp)[:, :Hos, :Wos, :]  # pad lanes = 0
    else:
        assert stride == 1 and Cin == planes, (
            "identity shortcut requires stride == 1 and in_planes == planes")
        res_img = jnp.pad(x.astype(jnp.bfloat16),
                          ((0, 0), (0, 0), (0, 0), (0, Cp - Cin)))
    res_flat = jnp.pad(res_img, ((0, 0), (0, 2), (0, 2), (0, 0))
                       ).reshape(N, (Ho + 2) * (Wo + 2), Cp)

    # conv2 + bn2 + residual add + relu (all fused in one kernel)
    s2, b2 = fold_bn(params["bn2"])
    y2, (Ho2, Wo2, Hq2, Wq2, _) = conv_bn_fused(
        h1, params["conv2_w"], s2, b2, stride=1, pad=1, residual=res_flat,
        relu=True, out_dtype=jnp.float32)
    out = y2.reshape(N, Hq2, Wq2, Cp)[:, :Ho2, :Wo2, :planes]
    return jnp.transpose(out, (0, 3, 1, 2))                    # NCHW, f32


def basic_block_reference(x_nchw, params, stride, eps=1e-5):
    """Pure-JAX reference mirroring the kernel's bf16 rounding points so the
    comparison tolerance stays tight (matmuls accumulate in f32 in both)."""
    f32 = jnp.float32
    rb = lambda a: a.astype(jnp.bfloat16).astype(f32)
    conv = lambda x, w, s, p: jax.lax.conv_general_dilated(
        x, w, (s, s), ((p, p), (p, p)), dimension_numbers=("NCHW", "OIHW", "NCHW"))

    def folded(w, bn):
        sc = bn["gamma"] / jnp.sqrt(bn["var"] + eps)
        bi = bn["beta"] - bn["mean"] * sc
        return rb(w * sc.reshape(-1, 1, 1, 1)), bi.reshape(1, -1, 1, 1)

    xb = rb(x_nchw)
    w1, bi1 = folded(params["conv1_w"], params["bn1"])
    h1 = rb(jax.nn.relu(conv(xb, w1, stride, 1) + bi1))
    w2, bi2 = folded(params["conv2_w"], params["bn2"])
    o = conv(h1, w2, 1, 1) + bi2
    if params["shortcut"] is not None:
        ws, bis = folded(params["shortcut"]["conv_w"], params["shortcut"]["bn"])
        sc = rb(conv(xb, ws, stride, 0) + bis)
    else:
        sc = xb
    return jax.nn.relu(o + sc)


def init_params(key, in_planes, planes, stride):
    ks = jax.random.split(key, 8)

    def bn_params(k, c):
        k1, k2, k3, k4 = jax.random.split(k, 4)
        return {
            "gamma": 1.0 + 0.1 * jax.random.normal(k1, (c,), jnp.float32),
            "beta": 0.1 * jax.random.normal(k2, (c,), jnp.float32),
            "mean": 0.1 * jax.random.normal(k3, (c,), jnp.float32),
            "var": 1.0 + jnp.abs(0.1 * jax.random.normal(k4, (c,), jnp.float32)),
        }

    params = {
        "conv1_w": 0.1 * jax.random.normal(ks[0], (planes, in_planes, 3, 3), jnp.float32),
        "bn1": bn_params(ks[1], planes),
        "conv2_w": 0.1 * jax.random.normal(ks[2], (planes, planes, 3, 3), jnp.float32),
        "bn2": bn_params(ks[3], planes),
        "shortcut": None,
    }
    if stride != 1 or in_planes != planes:
        params["shortcut"] = {
            "conv_w": 0.1 * jax.random.normal(ks[4], (planes, in_planes, 1, 1), jnp.float32),
            "bn": bn_params(ks[5], planes),
        }
    return params


if __name__ == "__main__":
    key = jax.random.PRNGKey(0)
    k_x, k_p, k_x2, k_p2 = jax.random.split(key, 4)

    # Config A: strided block with 1x1 conv shortcut (downsampling block).
    N, in_planes, planes, H, W, stride = 2, 4, 8, 16, 16, 2
    x = jax.random.normal(k_x, (N, in_planes, H, W), jnp.float32)
    params = init_params(k_p, in_planes, planes, stride)

    fwd = jax.jit(functools.partial(basic_block_forward, stride=stride))
    out = jax.block_until_ready(fwd(x, params))
    ref = jax.block_until_ready(basic_block_reference(x, params, stride))
    assert out.shape == (N, planes, H // stride, W // stride), out.shape
    assert jnp.allclose(out, ref, atol=2e-2, rtol=2e-2), float(jnp.max(jnp.abs(out - ref)))

    # Config B: identity-shortcut block (stride 1, in_planes == planes).
    x2 = jax.random.normal(k_x2, (N, planes, H, W), jnp.float32)
    params2 = init_params(k_p2, planes, planes, 1)
    fwd2 = jax.jit(functools.partial(basic_block_forward, stride=1))
    out2 = jax.block_until_ready(fwd2(x2, params2))
    ref2 = jax.block_until_ready(basic_block_reference(x2, params2, 1))
    assert out2.shape == (N, planes, H, W), out2.shape
    assert jnp.allclose(out2, ref2, atol=2e-2, rtol=2e-2), float(jnp.max(jnp.abs(out2 - ref2)))

    print("KERNEL_OK")
</pallas_src>

<mosaic_0001>
module attributes {stable_mosaic.version = 11 : i64} {
  func.func @_conv_bn_kernel(%arg0: i32, %arg1: i32, %arg2: memref<1x4x91x4xbf16, #tpu.memory_space<vmem>>, %arg3: memref<9x4x128xbf16, #tpu.memory_space<vmem>>, %arg4: memref<1x128xf32, #tpu.memory_space<vmem>>, %arg5: memref<1x81x128xbf16, #tpu.memory_space<vmem>>) attributes {dimension_semantics = [#tpu.dimension_semantics<parallel>, #tpu.dimension_semantics<parallel>], iteration_bounds = array<i64: 2, 1>, scalar_prefetch = 0 : i64, scratch_operands = 0 : i64, tpu.core_type = #tpu.core_type<tc>, window_params = [{transform_indices = @transform_0, window_bounds = array<i64: 1, 4, 91, 4>}, {transform_indices = @transform_1, window_bounds = array<i64: 9, 4, 128>}, {transform_indices = @transform_2, window_bounds = array<i64: 1, 128>}, {transform_indices = @transform_3, window_bounds = array<i64: 1, 81, 128>}]} {
    %c0 = arith.constant 0 : index
    %c0_0 = arith.constant 0 : index
    %c0_1 = arith.constant 0 : index
    %c0_2 = arith.constant 0 : index
    %0 = vector.load %arg2[%c0, %c0_0, %c0_1, %c0_2] : memref<1x4x91x4xbf16, #tpu.memory_space<vmem>>, vector<1x1x81x4xbf16>
    %1 = vector.shape_cast %0 : vector<1x1x81x4xbf16> to vector<81x4xbf16>
    %c0_3 = arith.constant 0 : index
    %c0_4 = arith.constant 0 : index
    %c0_5 = arith.constant 0 : index
    %2 = vector.load %arg3[%c0_3, %c0_4, %c0_5] : memref<9x4x128xbf16, #tpu.memory_space<vmem>>, vector<1x4x128xbf16>
    %3 = vector.shape_cast %2 : vector<1x4x128xbf16> to vector<4x128xbf16>
    %cst = arith.constant dense<0.000000e+00> : vector<81x128xf32>
    %4 = tpu.matmul %1, %3, %cst {dimension_numbers = #tpu.dot_dimension_numbers<[1], [0], [0], [1], [0, 0, 1, 1], [], []>} : vector<81x4xbf16>, vector<4x128xbf16>, vector<81x128xf32> -> vector<81x128xf32>
    %c0_6 = arith.constant 0 : index
    %c1 = arith.constant 1 : index
    %c0_7 = arith.constant 0 : index
    %c0_8 = arith.constant 0 : index
    %5 = vector.load %arg2[%c0_6, %c1, %c0_7, %c0_8] : memref<1x4x91x4xbf16, #tpu.memory_space<vmem>>, vector<1x1x81x4xbf16>
    %6 = vector.shape_cast %5 : vector<1x1x81x4xbf16> to vector<81x4xbf16>
    %c1_9 = arith.constant 1 : index
    %c0_10 = arith.constant 0 : index
    %c0_11 = arith.constant 0 : index
    %7 = vector.load %arg3[%c1_9, %c0_10, %c0_11] : memref<9x4x128xbf16, #tpu.memory_space<vmem>>, vector<1x4x128xbf16>
    %8 = vector.shape_cast %7 : vector<1x4x128xbf16> to vector<4x128xbf16>
    %cst_12 = arith.constant dense<0.000000e+00> : vector<81x128xf32>
    %9 = tpu.matmul %6, %8, %cst_12 {dimension_numbers = #tpu.dot_dimension_numbers<[1], [0], [0], [1], [0, 0, 1, 1], [], []>} : vector<81x4xbf16>, vector<4x128xbf16>, vector<81x128xf32> -> vector<81x128xf32>
    %10 = arith.addf %4, %9 : vector<81x128xf32>
    %c0_13 = arith.constant 0 : index
    %c0_14 = arith.constant 0 : index
    %c1_15 = arith.constant 1 : index
    %c0_16 = arith.constant 0 : index
    %11 = vector.load %arg2[%c0_13, %c0_14, %c1_15, %c0_16] : memref<1x4x91x4xbf16, #tpu.memory_space<vmem>>, vector<1x1x81x4xbf16>
    %12 = vector.shape_cast %11 : vector<1x1x81x4xbf16> to vector<81x4xbf16>
    %c2 = arith.constant 2 : index
    %c0_17 = arith.constant 0 : index
    %c0_18 = arith.constant 0 : index
    %13 = vector.load %arg3[%c2, %c0_17, %c0_18] : memref<9x4x128xbf16, #tpu.memory_space<vmem>>, vector<1x4x128xbf16>
    %14 = vector.shape_cast %13 : vector<1x4x128xbf16> to vector<4x128xbf16>
    %cst_19 = arith.constant dense<0.000000e+00> : vector<81x128xf32>
    %15 = tpu.matmul %12, %14, %cst_19 {dimension_numbers = #tpu.dot_dimension_numbers<[1], [0], [0], [1], [0, 0, 1, 1], [], []>} : vector<81x4xbf16>, vector<4x128xbf16>, vector<81x128xf32> -> vector<81x128xf32>
    %16 = arith.addf %10, %15 : vector<81x128xf32>
    %c0_20 = arith.constant 0 : index
    %c2_21 = arith.constant 2 : index
    %c0_22 = arith.constant 0 : index
    %c0_23 = arith.constant 0 : index
    %17 = vector.load %arg2[%c0_20, %c2_21, %c0_22, %c0_23] : memref<1x4x91x4xbf16, #tpu.memory_space<vmem>>, vector<1x1x81x4xbf16>
    %18 = vector.shape_cast %17 : vector<1x1x81x4xbf16> to vector<81x4xbf16>
    %c3 = arith.constant 3 : index
    %c0_24 = arith.constant 0 : index
    %c0_25 = arith.constant 0 : index
    %19 = vector.load %arg3[%c3, %c0_24, %c0_25] : memref<9x4x128xbf16, #tpu.memory_space<vmem>>, vector<1x4x128xbf16>
    %20 = vector.shape_cast %19 : vector<1x4x128xbf16> to vector<4x128xbf16>
    %cst_26 = arith.constant dense<0.000000e+00> : vector<81x128xf32>
    %21 = tpu.matmul %18, %20, %cst_26 {dimension_numbers = #tpu.dot_dimension_numbers<[1], [0], [0], [1], [0, 0, 1, 1], [], []>} : vector<81x4xbf16>, vector<4x128xbf16>, vector<81x128xf32> -> vector<81x128xf32>
    %22 = arith.addf %16, %21 : vector<81x128xf32>
    %c0_27 = arith.constant 0 : index
    %c3_28 = arith.constant 3 : index
    %c0_29 = arith.constant 0 : index
    %c0_30 = arith.constant 0 : index
    %23 = vector.load %arg2[%c0_27, %c3_28, %c0_29, %c0_30] : memref<1x4x91x4xbf16, #tpu.memory_space<vmem>>, vector<1x1x81x4xbf16>
    %24 = vector.shape_cast %23 : vector<1x1x81x4xbf16> to vector<81x4xbf16>
    %c4 = arith.constant 4 : index
    %c0_31 = arith.constant 0 : index
    %c0_32 = arith.constant 0 : index
    %25 = vector.load %arg3[%c4, %c0_31, %c0_32] : memref<9x4x128xbf16, #tpu.memory_space<vmem>>, vector<1x4x128xbf16>
    %26 = vector.shape_cast %25 : vector<1x4x128xbf16> to vector<4x128xbf16>
    %cst_33 = arith.constant dense<0.000000e+00> : vector<81x128xf32>
    %27 = tpu.matmul %24, %26, %cst_33 {dimension_numbers = #tpu.dot_dimension_numbers<[1], [0], [0], [1], [0, 0, 1, 1], [], []>} : vector<81x4xbf16>, vector<4x128xbf16>, vector<81x128xf32> -> vector<81x128xf32>
    %28 = arith.addf %22, %27 : vector<81x128xf32>
    %c0_34 = arith.constant 0 : index
    %c2_35 = arith.constant 2 : index
    %c1_36 = arith.constant 1 : index
    %c0_37 = arith.constant 0 : index
    %29 = vector.load %arg2[%c0_34, %c2_35, %c1_36, %c0_37] : memref<1x4x91x4xbf16, #tpu.memory_space<vmem>>, vector<1x1x81x4xbf16>
    %30 = vector.shape_cast %29 : vector<1x1x81x4xbf16> to vector<81x4xbf16>
    %c5 = arith.constant 5 : index
    %c0_38 = arith.constant 0 : index
    %c0_39 = arith.constant 0 : index
    %31 = vector.load %arg3[%c5, %c0_38, %c0_39] : memref<9x4x128xbf16, #tpu.memory_space<vmem>>, vector<1x4x128xbf16>
    %32 = vector.shape_cast %31 : vector<1x4x128xbf16> to vector<4x128xbf16>
    %cst_40 = arith.constant dense<0.000000e+00> : vector<81x128xf32>
    %33 = tpu.matmul %30, %32, %cst_40 {dimension_numbers = #tpu.dot_dimension_numbers<[1], [0], [0], [1], [0, 0, 1, 1], [], []>} : vector<81x4xbf16>, vector<4x128xbf16>, vector<81x128xf32> -> vector<81x128xf32>
    %34 = arith.addf %28, %33 : vector<81x128xf32>
    %c0_41 = arith.constant 0 : index
    %c0_42 = arith.constant 0 : index
    %c9 = arith.constant 9 : index
    %c0_43 = arith.constant 0 : index
    %35 = vector.load %arg2[%c0_41, %c0_42, %c9, %c0_43] : memref<1x4x91x4xbf16, #tpu.memory_space<vmem>>, vector<1x1x81x4xbf16>
    %36 = vector.shape_cast %35 : vector<1x1x81x4xbf16> to vector<81x4xbf16>
    %c6 = arith.constant 6 : index
    %c0_44 = arith.constant 0 : index
    %c0_45 = arith.constant 0 : index
    %37 = vector.load %arg3[%c6, %c0_44, %c0_45] : memref<9x4x128xbf16, #tpu.memory_space<vmem>>, vector<1x4x128xbf16>
    %38 = vector.shape_cast %37 : vector<1x4x128xbf16> to vector<4x128xbf16>
    %cst_46 = arith.constant dense<0.000000e+00> : vector<81x128xf32>
    %39 = tpu.matmul %36, %38, %cst_46 {dimension_numbers = #tpu.dot_dimension_numbers<[1], [0], [0], [1], [0, 0, 1, 1], [], []>} : vector<81x4xbf16>, vector<4x128xbf16>, vector<81x128xf32> -> vector<81x128xf32>
    %40 = arith.addf %34, %39 : vector<81x128xf32>
    %c0_47 = arith.constant 0 : index
    %c1_48 = arith.constant 1 : index
    %c9_49 = arith.constant 9 : index
    %c0_50 = arith.constant 0 : index
    %41 = vector.load %arg2[%c0_47, %c1_48, %c9_49, %c0_50] : memref<1x4x91x4xbf16, #tpu.memory_space<vmem>>, vector<1x1x81x4xbf16>
    %42 = vector.shape_cast %41 : vector<1x1x81x4xbf16> to vector<81x4xbf16>
    %c7 = arith.constant 7 : index
    %c0_51 = arith.constant 0 : index
    %c0_52 = arith.constant 0 : index
    %43 = vector.load %arg3[%c7, %c0_51, %c0_52] : memref<9x4x128xbf16, #tpu.memory_space<vmem>>, vector<1x4x128xbf16>
    %44 = vector.shape_cast %43 : vector<1x4x128xbf16> to vector<4x128xbf16>
    %cst_53 = arith.constant dense<0.000000e+00> : vector<81x128xf32>
    %45 = tpu.matmul %42, %44, %cst_53 {dimension_numbers = #tpu.dot_dimension_numbers<[1], [0], [0], [1], [0, 0, 1, 1], [], []>} : vector<81x4xbf16>, vector<4x128xbf16>, vector<81x128xf32> -> vector<81x128xf32>
    %46 = arith.addf %40, %45 : vector<81x128xf32>
    %c0_54 = arith.constant 0 : index
    %c0_55 = arith.constant 0 : index
    %c10 = arith.constant 10 : index
    %c0_56 = arith.constant 0 : index
    %47 = vector.load %arg2[%c0_54, %c0_55, %c10, %c0_56] : memref<1x4x91x4xbf16, #tpu.memory_space<vmem>>, vector<1x1x81x4xbf16>
    %48 = vector.shape_cast %47 : vector<1x1x81x4xbf16> to vector<81x4xbf16>
    %c8 = arith.constant 8 : index
    %c0_57 = arith.constant 0 : index
    %c0_58 = arith.constant 0 : index
    %49 = vector.load %arg3[%c8, %c0_57, %c0_58] : memref<9x4x128xbf16, #tpu.memory_space<vmem>>, vector<1x4x128xbf16>
    %50 = vector.shape_cast %49 : vector<1x4x128xbf16> to vector<4x128xbf16>
    %cst_59 = arith.constant dense<0.000000e+00> : vector<81x128xf32>
    %51 = tpu.matmul %48, %50, %cst_59 {dimension_numbers = #tpu.dot_dimension_numbers<[1], [0], [0], [1], [0, 0, 1, 1], [], []>} : vector<81x4xbf16>, vector<4x128xbf16>, vector<81x128xf32> -> vector<81x128xf32>
    %52 = arith.addf %46, %51 : vector<81x128xf32>
    %c0_60 = arith.constant 0 : index
    %c0_61 = arith.constant 0 : index
    %53 = vector.load %arg4[%c0_60, %c0_61] : memref<1x128xf32, #tpu.memory_space<vmem>>, vector<1x128xf32>
    %54 = vector.broadcast %53 : vector<1x128xf32> to vector<81x128xf32>
    %55 = arith.addf %52, %54 : vector<81x128xf32>
    %cst_62 = arith.constant 0.000000e+00 : f32
    %56 = vector.broadcast %cst_62 : f32 to vector<81x128xf32>
    %57 = arith.maximumf %55, %56 : vector<81x128xf32>
    %58 = arith.truncf %57 : vector<81x128xf32> to vector<81x128xbf16>
    %c0_63 = arith.constant 0 : index
    %c0_64 = arith.constant 0 : index
    %c0_65 = arith.constant 0 : index
    %59 = vector.load %arg5[%c0_63, %c0_64, %c0_65] : memref<1x81x128xbf16, #tpu.memory_space<vmem>>, vector<1x81x128xbf16>
    %60 = vector.shape_cast %59 : vector<1x81x128xbf16> to vector<81x128xbf16>
    %61 = vector.shape_cast %58 : vector<81x128xbf16> to vector<1x81x128xbf16>
    tpu.vector_store %arg5[%c0_63, %c0_64, %c0_65], %61 {strides = array<i32>} : memref<1x81x128xbf16, #tpu.memory_space<vmem>>, vector<1x81x128xbf16>,
    return
  }
  func.func @transform_0(%arg0: i32, %arg1: i32) -> (i32, i32, i32, i32) {
    %c0_i32 = arith.constant 0 : i32
    %c0_i32_0 = arith.constant 0 : i32
    %c0_i32_1 = arith.constant 0 : i32
    %c0_i32_2 = arith.constant 0 : i32
    return %arg0, %c0_i32, %c0_i32_0, %c0_i32_1 : i32, i32, i32, i32
  }
  func.func @transform_1(%arg0: i32, %arg1: i32) -> (i32, i32, i32) {
    %c0_i32 = arith.constant 0 : i32
    %c0_i32_0 = arith.constant 0 : i32
    %c0_i32_1 = arith.constant 0 : i32
    return %c0_i32, %c0_i32_0, %arg1 : i32, i32, i32
  }
  func.func @transform_2(%arg0: i32, %arg1: i32) -> (i32, i32) {
    %c0_i32 = arith.constant 0 : i32
    %c0_i32_0 = arith.constant 0 : i32
    return %c0_i32, %arg1 : i32, i32
  }
  func.func @transform_3(%arg0: i32, %arg1: i32) -> (i32, i32, i32) {
    %c0_i32 = arith.constant 0 : i32
    %c0_i32_0 = arith.constant 0 : i32
    return %arg0, %c0_i32, %arg1 : i32, i32, i32
  }
}

module attributes {stable_mosaic.version = 11 : i64} {
  func.func @_conv_bn_kernel(%arg0: i32, %arg1: i32, %arg2: memref<1x4x64x4xbf16, #tpu.memory_space<vmem>>, %arg3: memref<1x4x128xbf16, #tpu.memory_space<vmem>>, %arg4: memref<1x128xf32, #tpu.memory_space<vmem>>, %arg5: memref<1x64x128xbf16, #tpu.memory_space<vmem>>) attributes {dimension_semantics = [#tpu.dimension_semantics<parallel>, #tpu.dimension_semantics<parallel>], iteration_bounds = array<i64: 2, 1>, scalar_prefetch = 0 : i64, scratch_operands = 0 : i64, tpu.core_type = #tpu.core_type<tc>, window_params = [{transform_indices = @transform_0, window_bounds = array<i64: 1, 4, 64, 4>}, {transform_indices = @transform_1, window_bounds = array<i64: 1, 4, 128>}, {transform_indices = @transform_2, window_bounds = array<i64: 1, 128>}, {transform_indices = @transform_3, window_bounds = array<i64: 1, 64, 128>}]} {
    %c0 = arith.constant 0 : index
    %c0_0 = arith.constant 0 : index
    %c0_1 = arith.constant 0 : index
    %c0_2 = arith.constant 0 : index
    %0 = vector.load %arg2[%c0, %c0_0, %c0_1, %c0_2] : memref<1x4x64x4xbf16, #tpu.memory_space<vmem>>, vector<1x1x64x4xbf16>
    %1 = vector.shape_cast %0 : vector<1x1x64x4xbf16> to vector<64x4xbf16>
    %c0_3 = arith.constant 0 : index
    %c0_4 = arith.constant 0 : index
    %c0_5 = arith.constant 0 : index
    %2 = vector.load %arg3[%c0_3, %c0_4, %c0_5] : memref<1x4x128xbf16, #tpu.memory_space<vmem>>, vector<1x4x128xbf16>
    %3 = vector.shape_cast %2 : vector<1x4x128xbf16> to vector<4x128xbf16>
    %cst = arith.constant dense<0.000000e+00> : vector<64x128xf32>
    %4 = tpu.matmul %1, %3, %cst {dimension_numbers = #tpu.dot_dimension_numbers<[1], [0], [0], [1], [0, 0, 1, 1], [], []>} : vector<64x4xbf16>, vector<4x128xbf16>, vector<64x128xf32> -> vector<64x128xf32>
    %c0_6 = arith.constant 0 : index
    %c0_7 = arith.constant 0 : index
    %5 = vector.load %arg4[%c0_6, %c0_7] : memref<1x128xf32, #tpu.memory_space<vmem>>, vector<1x128xf32>
    %6 = vector.broadcast %5 : vector<1x128xf32> to vector<64x128xf32>
    %7 = arith.addf %4, %6 : vector<64x128xf32>
    %8 = arith.truncf %7 : vector<64x128xf32> to vector<64x128xbf16>
    %c0_8 = arith.constant 0 : index
    %c0_9 = arith.constant 0 : index
    %c0_10 = arith.constant 0 : index
    %9 = vector.load %arg5[%c0_8, %c0_9, %c0_10] : memref<1x64x128xbf16, #tpu.memory_space<vmem>>, vector<1x64x128xbf16>
    %10 = vector.shape_cast %9 : vector<1x64x128xbf16> to vector<64x128xbf16>
    %11 = vector.shape_cast %8 : vector<64x128xbf16> to vector<1x64x128xbf16>
    tpu.vector_store %arg5[%c0_8, %c0_9, %c0_10], %11 {strides = array<i32>} : memref<1x64x128xbf16, #tpu.memory_space<vmem>>, vector<1x64x128xbf16>,
    return
  }
  func.func @transform_0(%arg0: i32, %arg1: i32) -> (i32, i32, i32, i32) {
    %c0_i32 = arith.constant 0 : i32
    %c0_i32_0 = arith.constant 0 : i32
    %c0_i32_1 = arith.constant 0 : i32
    %c0_i32_2 = arith.constant 0 : i32
    return %arg0, %c0_i32, %c0_i32_0, %c0_i32_1 : i32, i32, i32, i32
  }
  func.func @transform_1(%arg0: i32, %arg1: i32) -> (i32, i32, i32) {
    %c0_i32 = arith.constant 0 : i32
    %c0_i32_0 = arith.constant 0 : i32
    %c0_i32_1 = arith.constant 0 : i32
    return %c0_i32, %c0_i32_0, %arg1 : i32, i32, i32
  }
  func.func @transform_2(%arg0: i32, %arg1: i32) -> (i32, i32) {
    %c0_i32 = arith.constant 0 : i32
    %c0_i32_0 = arith.constant 0 : i32
    return %c0_i32, %arg1 : i32, i32
  }
  func.func @transform_3(%arg0: i32, %arg1: i32) -> (i32, i32, i32) {
    %c0_i32 = arith.constant 0 : i32
    %c0_i32_0 = arith.constant 0 : i32
    return %arg0, %c0_i32, %arg1 : i32, i32, i32
  }
}

module attributes {stable_mosaic.version = 11 : i64} {
  func.func @_conv_bn_kernel(%arg0: i32, %arg1: i32, %arg2: memref<1x1x122x8xbf16, #tpu.memory_space<vmem>>, %arg3: memref<9x8x128xbf16, #tpu.memory_space<vmem>>, %arg4: memref<1x128xf32, #tpu.memory_space<vmem>>, %arg5: memref<1x100x128xbf16, #tpu.memory_space<vmem>>, %arg6: memref<1x100x128xf32, #tpu.memory_space<vmem>>) attributes {dimension_semantics = [#tpu.dimension_semantics<parallel>, #tpu.dimension_semantics<parallel>], iteration_bounds = array<i64: 2, 1>, scalar_prefetch = 0 : i64, scratch_operands = 0 : i64, tpu.core_type = #tpu.core_type<tc>, window_params = [{transform_indices = @transform_0, window_bounds = array<i64: 1, 1, 122, 8>}, {transform_indices = @transform_1, window_bounds = array<i64: 9, 8, 128>}, {transform_indices = @transform_2, window_bounds = array<i64: 1, 128>}, {transform_indices = @transform_3, window_bounds = array<i64: 1, 100, 128>}, {transform_indices = @transform_4, window_bounds = array<i64: 1, 100, 128>}]} {
    %c0 = arith.constant 0 : index
    %c0_0 = arith.constant 0 : index
    %c0_1 = arith.constant 0 : index
    %c0_2 = arith.constant 0 : index
    %0 = vector.load %arg2[%c0, %c0_0, %c0_1, %c0_2] : memref<1x1x122x8xbf16, #tpu.memory_space<vmem>>, vector<1x1x100x8xbf16>
    %1 = vector.shape_cast %0 : vector<1x1x100x8xbf16> to vector<100x8xbf16>
    %c0_3 = arith.constant 0 : index
    %c0_4 = arith.constant 0 : index
    %c0_5 = arith.constant 0 : index
    %2 = vector.load %arg3[%c0_3, %c0_4, %c0_5] : memref<9x8x128xbf16, #tpu.memory_space<vmem>>, vector<1x8x128xbf16>
    %3 = vector.shape_cast %2 : vector<1x8x128xbf16> to vector<8x128xbf16>
    %cst = arith.constant dense<0.000000e+00> : vector<100x128xf32>
    %4 = tpu.matmul %1, %3, %cst {dimension_numbers = #tpu.dot_dimension_numbers<[1], [0], [0], [1], [0, 0, 1, 1], [], []>} : vector<100x8xbf16>, vector<8x128xbf16>, vector<100x128xf32> -> vector<100x128xf32>
    %c0_6 = arith.constant 0 : index
    %c0_7 = arith.constant 0 : index
    %c1 = arith.constant 1 : index
    %c0_8 = arith.constant 0 : index
    %5 = vector.load %arg2[%c0_6, %c0_7, %c1, %c0_8] : memref<1x1x122x8xbf16, #tpu.memory_space<vmem>>, vector<1x1x100x8xbf16>
    %6 = vector.shape_cast %5 : vector<1x1x100x8xbf16> to vector<100x8xbf16>
    %c1_9 = arith.constant 1 : index
    %c0_10 = arith.constant 0 : index
    %c0_11 = arith.constant 0 : index
    %7 = vector.load %arg3[%c1_9, %c0_10, %c0_11] : memref<9x8x128xbf16, #tpu.memory_space<vmem>>, vector<1x8x128xbf16>
    %8 = vector.shape_cast %7 : vector<1x8x128xbf16> to vector<8x128xbf16>
    %cst_12 = arith.constant dense<0.000000e+00> : vector<100x128xf32>
    %9 = tpu.matmul %6, %8, %cst_12 {dimension_numbers = #tpu.dot_dimension_numbers<[1], [0], [0], [1], [0, 0, 1, 1], [], []>} : vector<100x8xbf16>, vector<8x128xbf16>, vector<100x128xf32> -> vector<100x128xf32>
    %10 = arith.addf %4, %9 : vector<100x128xf32>
    %c0_13 = arith.constant 0 : index
    %c0_14 = arith.constant 0 : index
    %c2 = arith.constant 2 : index
    %c0_15 = arith.constant 0 : index
    %11 = vector.load %arg2[%c0_13, %c0_14, %c2, %c0_15] : memref<1x1x122x8xbf16, #tpu.memory_space<vmem>>, vector<1x1x100x8xbf16>
    %12 = vector.shape_cast %11 : vector<1x1x100x8xbf16> to vector<100x8xbf16>
    %c2_16 = arith.constant 2 : index
    %c0_17 = arith.constant 0 : index
    %c0_18 = arith.constant 0 : index
    %13 = vector.load %arg3[%c2_16, %c0_17, %c0_18] : memref<9x8x128xbf16, #tpu.memory_space<vmem>>, vector<1x8x128xbf16>
    %14 = vector.shape_cast %13 : vector<1x8x128xbf16> to vector<8x128xbf16>
    %cst_19 = arith.constant dense<0.000000e+00> : vector<100x128xf32>
    %15 = tpu.matmul %12, %14, %cst_19 {dimension_numbers = #tpu.dot_dimension_numbers<[1], [0], [0], [1], [0, 0, 1, 1], [], []>} : vector<100x8xbf16>, vector<8x128xbf16>, vector<100x128xf32> -> vector<100x128xf32>
    %16 = arith.addf %10, %15 : vector<100x128xf32>
    %c0_20 = arith.constant 0 : index
    %c0_21 = arith.constant 0 : index
    %c10 = arith.constant 10 : index
    %c0_22 = arith.constant 0 : index
    %17 = vector.load %arg2[%c0_20, %c0_21, %c10, %c0_22] : memref<1x1x122x8xbf16, #tpu.memory_space<vmem>>, vector<1x1x100x8xbf16>
    %18 = vector.shape_cast %17 : vector<1x1x100x8xbf16> to vector<100x8xbf16>
    %c3 = arith.constant 3 : index
    %c0_23 = arith.constant 0 : index
    %c0_24 = arith.constant 0 : index
    %19 = vector.load %arg3[%c3, %c0_23, %c0_24] : memref<9x8x128xbf16, #tpu.memory_space<vmem>>, vector<1x8x128xbf16>
    %20 = vector.shape_cast %19 : vector<1x8x128xbf16> to vector<8x128xbf16>
    %cst_25 = arith.constant dense<0.000000e+00> : vector<100x128xf32>
    %21 = tpu.matmul %18, %20, %cst_25 {dimension_numbers = #tpu.dot_dimension_numbers<[1], [0], [0], [1], [0, 0, 1, 1], [], []>} : vector<100x8xbf16>, vector<8x128xbf16>, vector<100x128xf32> -> vector<100x128xf32>
    %22 = arith.addf %16, %21 : vector<100x128xf32>
    %c0_26 = arith.constant 0 : index
    %c0_27 = arith.constant 0 : index
    %c11 = arith.constant 11 : index
    %c0_28 = arith.constant 0 : index
    %23 = vector.load %arg2[%c0_26, %c0_27, %c11, %c0_28] : memref<1x1x122x8xbf16, #tpu.memory_space<vmem>>, vector<1x1x100x8xbf16>
    %24 = vector.shape_cast %23 : vector<1x1x100x8xbf16> to vector<100x8xbf16>
    %c4 = arith.constant 4 : index
    %c0_29 = arith.constant 0 : index
    %c0_30 = arith.constant 0 : index
    %25 = vector.load %arg3[%c4, %c0_29, %c0_30] : memref<9x8x128xbf16, #tpu.memory_space<vmem>>, vector<1x8x128xbf16>
    %26 = vector.shape_cast %25 : vector<1x8x128xbf16> to vector<8x128xbf16>
    %cst_31 = arith.constant dense<0.000000e+00> : vector<100x128xf32>
    %27 = tpu.matmul %24, %26, %cst_31 {dimension_numbers = #tpu.dot_dimension_numbers<[1], [0], [0], [1], [0, 0, 1, 1], [], []>} : vector<100x8xbf16>, vector<8x128xbf16>, vector<100x128xf32> -> vector<100x128xf32>
    %28 = arith.addf %22, %27 : vector<100x128xf32>
    %c0_32 = arith.constant 0 : index
    %c0_33 = arith.constant 0 : index
    %c12 = arith.constant 12 : index
    %c0_34 = arith.constant 0 : index
    %29 = vector.load %arg2[%c0_32, %c0_33, %c12, %c0_34] : memref<1x1x122x8xbf16, #tpu.memory_space<vmem>>, vector<1x1x100x8xbf16>
    %30 = vector.shape_cast %29 : vector<1x1x100x8xbf16> to vector<100x8xbf16>
    %c5 = arith.constant 5 : index
    %c0_35 = arith.constant 0 : index
    %c0_36 = arith.constant 0 : index
    %31 = vector.load %arg3[%c5, %c0_35, %c0_36] : memref<9x8x128xbf16, #tpu.memory_space<vmem>>, vector<1x8x128xbf16>
    %32 = vector.shape_cast %31 : vector<1x8x128xbf16> to vector<8x128xbf16>
    %cst_37 = arith.constant dense<0.000000e+00> : vector<100x128xf32>
    %33 = tpu.matmul %30, %32, %cst_37 {dimension_numbers = #tpu.dot_dimension_numbers<[1], [0], [0], [1], [0, 0, 1, 1], [], []>} : vector<100x8xbf16>, vector<8x128xbf16>, vector<100x128xf32> -> vector<100x128xf32>
    %34 = arith.addf %28, %33 : vector<100x128xf32>
    %c0_38 = arith.constant 0 : index
    %c0_39 = arith.constant 0 : index
    %c20 = arith.constant 20 : index
    %c0_40 = arith.constant 0 : index
    %35 = vector.load %arg2[%c0_38, %c0_39, %c20, %c0_40] : memref<1x1x122x8xbf16, #tpu.memory_space<vmem>>, vector<1x1x100x8xbf16>
    %36 = vector.shape_cast %35 : vector<1x1x100x8xbf16> to vector<100x8xbf16>
    %c6 = arith.constant 6 : index
    %c0_41 = arith.constant 0 : index
    %c0_42 = arith.constant 0 : index
    %37 = vector.load %arg3[%c6, %c0_41, %c0_42] : memref<9x8x128xbf16, #tpu.memory_space<vmem>>, vector<1x8x128xbf16>
    %38 = vector.shape_cast %37 : vector<1x8x128xbf16> to vector<8x128xbf16>
    %cst_43 = arith.constant dense<0.000000e+00> : vector<100x128xf32>
    %39 = tpu.matmul %36, %38, %cst_43 {dimension_numbers = #tpu.dot_dimension_numbers<[1], [0], [0], [1], [0, 0, 1, 1], [], []>} : vector<100x8xbf16>, vector<8x128xbf16>, vector<100x128xf32> -> vector<100x128xf32>
    %40 = arith.addf %34, %39 : vector<100x128xf32>
    %c0_44 = arith.constant 0 : index
    %c0_45 = arith.constant 0 : index
    %c21 = arith.constant 21 : index
    %c0_46 = arith.constant 0 : index
    %41 = vector.load %arg2[%c0_44, %c0_45, %c21, %c0_46] : memref<1x1x122x8xbf16, #tpu.memory_space<vmem>>, vector<1x1x100x8xbf16>
    %42 = vector.shape_cast %41 : vector<1x1x100x8xbf16> to vector<100x8xbf16>
    %c7 = arith.constant 7 : index
    %c0_47 = arith.constant 0 : index
    %c0_48 = arith.constant 0 : index
    %43 = vector.load %arg3[%c7, %c0_47, %c0_48] : memref<9x8x128xbf16, #tpu.memory_space<vmem>>, vector<1x8x128xbf16>
    %44 = vector.shape_cast %43 : vector<1x8x128xbf16> to vector<8x128xbf16>
    %cst_49 = arith.constant dense<0.000000e+00> : vector<100x128xf32>
    %45 = tpu.matmul %42, %44, %cst_49 {dimension_numbers = #tpu.dot_dimension_numbers<[1], [0], [0], [1], [0, 0, 1, 1], [], []>} : vector<100x8xbf16>, vector<8x128xbf16>, vector<100x128xf32> -> vector<100x128xf32>
    %46 = arith.addf %40, %45 : vector<100x128xf32>
    %c0_50 = arith.constant 0 : index
    %c0_51 = arith.constant 0 : index
    %c22 = arith.constant 22 : index
    %c0_52 = arith.constant 0 : index
    %47 = vector.load %arg2[%c0_50, %c0_51, %c22, %c0_52] : memref<1x1x122x8xbf16, #tpu.memory_space<vmem>>, vector<1x1x100x8xbf16>
    %48 = vector.shape_cast %47 : vector<1x1x100x8xbf16> to vector<100x8xbf16>
    %c8 = arith.constant 8 : index
    %c0_53 = arith.constant 0 : index
    %c0_54 = arith.constant 0 : index
    %49 = vector.load %arg3[%c8, %c0_53, %c0_54] : memref<9x8x128xbf16, #tpu.memory_space<vmem>>, vector<1x8x128xbf16>
    %50 = vector.shape_cast %49 : vector<1x8x128xbf16> to vector<8x128xbf16>
    %cst_55 = arith.constant dense<0.000000e+00> : vector<100x128xf32>
    %51 = tpu.matmul %48, %50, %cst_55 {dimension_numbers = #tpu.dot_dimension_numbers<[1], [0], [0], [1], [0, 0, 1, 1], [], []>} : vector<100x8xbf16>, vector<8x128xbf16>, vector<100x128xf32> -> vector<100x128xf32>
    %52 = arith.addf %46, %51 : vector<100x128xf32>
    %c0_56 = arith.constant 0 : index
    %c0_57 = arith.constant 0 : index
    %53 = vector.load %arg4[%c0_56, %c0_57] : memref<1x128xf32, #tpu.memory_space<vmem>>, vector<1x128xf32>
    %54 = vector.broadcast %53 : vector<1x128xf32> to vector<100x128xf32>
    %55 = arith.addf %52, %54 : vector<100x128xf32>
    %c0_58 = arith.constant 0 : index
    %c0_59 = arith.constant 0 : index
    %c0_60 = arith.constant 0 : index
    %56 = vector.load %arg5[%c0_58, %c0_59, %c0_60] : memref<1x100x128xbf16, #tpu.memory_space<vmem>>, vector<1x100x128xbf16>
    %57 = vector.shape_cast %56 : vector<1x100x128xbf16> to vector<100x128xbf16>
    %58 = arith.extf %57 : vector<100x128xbf16> to vector<100x128xf32>
    %59 = arith.addf %55, %58 : vector<100x128xf32>
    %cst_61 = arith.constant 0.000000e+00 : f32
    %60 = vector.broadcast %cst_61 : f32 to vector<100x128xf32>
    %61 = arith.maximumf %59, %60 : vector<100x128xf32>
    %c0_62 = arith.constant 0 : index
    %c0_63 = arith.constant 0 : index
    %c0_64 = arith.constant 0 : index
    %62 = vector.load %arg6[%c0_62, %c0_63, %c0_64] : memref<1x100x128xf32, #tpu.memory_space<vmem>>, vector<1x100x128xf32>
    %63 = vector.shape_cast %62 : vector<1x100x128xf32> to vector<100x128xf32>
    %64 = vector.shape_cast %61 : vector<100x128xf32> to vector<1x100x128xf32>
    tpu.vector_store %arg6[%c0_62, %c0_63, %c0_64], %64 {strides = array<i32>} : memref<1x100x128xf32, #tpu.memory_space<vmem>>, vector<1x100x128xf32>,
    return
  }
  func.func @transform_0(%arg0: i32, %arg1: i32) -> (i32, i32, i32, i32) {
    %c0_i32 = arith.constant 0 : i32
    %c0_i32_0 = arith.constant 0 : i32
    %c0_i32_1 = arith.constant 0 : i32
    %c0_i32_2 = arith.constant 0 : i32
    return %arg0, %c0_i32, %c0_i32_0, %c0_i32_1 : i32, i32, i32, i32
  }
  func.func @transform_1(%arg0: i32, %arg1: i32) -> (i32, i32, i32) {
    %c0_i32 = arith.constant 0 : i32
    %c0_i32_0 = arith.constant 0 : i32
    %c0_i32_1 = arith.constant 0 : i32
    return %c0_i32, %c0_i32_0, %arg1 : i32, i32, i32
  }
  func.func @transform_2(%arg0: i32, %arg1: i32) -> (i32, i32) {
    %c0_i32 = arith.constant 0 : i32
    %c0_i32_0 = arith.constant 0 : i32
    return %c0_i32, %arg1 : i32, i32
  }
  func.func @transform_3(%arg0: i32, %arg1: i32) -> (i32, i32, i32) {
    %c0_i32 = arith.constant 0 : i32
    %c0_i32_0 = arith.constant 0 : i32
    return %arg0, %c0_i32, %arg1 : i32, i32, i32
  }
  func.func @transform_4(%arg0: i32, %arg1: i32) -> (i32, i32, i32) {
    %c0_i32 = arith.constant 0 : i32
    %c0_i32_0 = arith.constant 0 : i32
    return %arg0, %c0_i32, %arg1 : i32, i32, i32
  }
}

</mosaic_0001>

<bundles_post_ra>
// kernel: basic_block_forward.4
= control target key start
LH: loop header
LB: loop body
LE: loop exit
PB: predicated region body
PF: predicated region fallthrough
CT: control target
= control target key end

     0   :  { %s640_s12 = smov 0   ;;  %s642_s13 = smov 0   ;;  %s679_s0 = inlined_call_operand.vmem [shape: bf16[2,4,64,4], index: 0, kind: input, shape index: {}]   ;;  %s680_s1 = inlined_call_operand.vmem [shape: bf16[1,4,128], index: 1, kind: input, shape index: {}]   ;;  %s681_s2 = inlined_call_operand.vmem [shape: f32[1,128], index: 2, kind: input, shape index: {}]   ;;  %s682_s3 = inlined_call_operand.vmem [shape: bf16[2,64,128], index: 3, kind: output, shape index: {}]  }
   0x1   :  { %s644_s14 = smov 0  }
   0x2 LB: > { %s25_s15 = sadd.s32 1, %s614_s13  ;;  %p492_p0 = scmp.ge.s32.totalorder %s618_s14, 1  ;;  %s618_s14 = sphi %s644_s14, %s13_s14   ;;  %s614_s13 = sphi %s642_s13, %s684_s13   ;;  %s610_s12 = sphi %s640_s12, %s683_s12  }
   0x3   : > { %p27_p1 = scmp.ge.s32.totalorder %s25_s15, 2  ;;  %p168_p2 = scmp.lt.s32.totalorder %s618_s14, 3 }
   0x5   : > { %s686_s15 = smov (%p27_p1, %s25_s15), 0  ;;  %p169_p3 = pnand %p492_p0, %p168_p2 }
   0x6   : > { %v231_v0 = vld [vmem:[%s680_s1] sm:$0x3] (!%p169_p3)  ;;  %vm272_vm0 = vcmask (!%p169_p3), 1041408   ;;  %p202_p4 = scmp.lt.s32.totalorder (!%p169_p3), %s610_s12, 1  ;;  %vm259_vm1 = vcmask (!%p169_p3), 31744  }
   0x7   : > { %172 = sbr.rel (%p169_p3) target bundleno = 239 (0xef), region = 32  ;;  %566 = vmatprep.subr.msk.bf16.mxu0 (!%p169_p3), %vm272_vm0, %v231_v0  ;;  %567 = vmatprep.subr.msk.bf16.mxu1 (!%p169_p3), %vm272_vm0, %v231_v0  ;;  %v274_v1 = vsel (!%p169_p3), %vm272_vm0, %v231_v0, 0  ;;  %v497_v7 = vld [vmem:[%s681_s2] ss:$0 sm:$0xff] (!%p169_p3) }
   0x8   : > { %555 = vmatpush3.bf16.msra.mxu0 (!%p169_p3), %v274_v1  ;;  %565 = vmatpush3.bf16.msra.mxu1 (!%p169_p3), %v274_v1 }
   0xe   : > { %s688_s12 = smov (!%p202_p4, %s610_s12), 1 }
   0xf   : > { %s516_s18 = sshll.u32 %s688_s12, 7  ;;  %s517_s24 = sshll.u32 %s688_s12, 5 }
  0x10   : > { %s206_s21 = scalar_lea.vmem %s679_s0, %s516_s18  ;;  %s221_s27 = scalar_lea.vmem %s682_s3, %s517_s24 }
  0x11   : > { %v592_v2 = vld [vmem:[%s206_s21] sm:$0xff]   ;;  %v593_v3 = vld [vmem:[%s206_s21 + $0x10] sm:$0xff]   ;;  %v594_v4 = vld [vmem:[%s206_s21 + $0x8] sm:$0xff]  }
  0x12   : > { %556 = vmatprep.mubr.msk.bf16.mxu0 %vm259_vm1, %v592_v2  ;;  %560 = vmatprep.mubr.msk.bf16.mxu1 %vm259_vm1, %v593_v3  ;;  %v595_v5 = vld [vmem:[%s206_s21 + $0x18] sm:$0xff]  }
  0x13   : > { %557 = vmatmul.mubr.msk.bf16.vlgmr.msra.gmra.mrb[0].mxu0 %vm259_vm1, %v594_v4  ;;  %561 = vmatmul.mubr.msk.bf16.vlgmr.msra.gmra.mrb[0].mxu1 %vm259_vm1, %v595_v5 }
  0xe6   : > { %v558_v6 = vpop.f32.mrb[0].mxu0  ;;  %v562_v8 = vpop.f32.mrb[0].mxu1 }
  0xe7   : > { %v310_v9 = vpop.f32.mrb[1].mxu0  ;;  %v326_v10 = vpop.f32.mrb[1].mxu1  ;;  %v319_v12 = vadd.f32 %v558_v6, %v497_v7  ;;  %v335_v16 = vadd.f32 %v562_v8, %v497_v7 }
  0xe8   : > { %v559_v11 = vpop.f32.mrb[2].mxu0  ;;  %v563_v14 = vpop.f32.mrb[2].mxu1  ;;  %v311_v17 = vadd.f32 %v497_v7, %v310_v9  ;;  %v327_v21 = vadd.f32 %v497_v7, %v326_v10 }
  0xe9   : > { %v322_v13 = vadd.f32 %v559_v11, %v497_v7  ;;  %v313_v15 = vpop.f32.mrb[3].mxu0  ;;  %v338_v18 = vadd.f32 %v563_v14, %v497_v7  ;;  %v329_v20 = vpop.f32.mrb[3].mxu1 }
  0xea   : > { %v314_v19 = vadd.f32 %v497_v7, %v313_v15  ;;  %v330_v23 = vadd.f32 %v497_v7, %v329_v20 }
  0xeb   : > { %v534_v22 = vpack.c.bf16 %v322_v13, %v319_v12  ;;  %v544_v24 = vpack.c.bf16 %v338_v18, %v335_v16 }
  0xec   : > { %v529_v25 = vpack.c.bf16 %v314_v19, %v311_v17  ;;  %v539_v26 = vpack.c.bf16 %v330_v23, %v327_v21 }
  0xed   : > { %546 = vst [vmem:[%s221_s27 + $0x8] sm:$0xff] %v534_v22   ;;  %548 = vst [vmem:[%s221_s27 + $0x18] sm:$0xff] %v544_v24  }
  0xee   : > { %530 = vst [vmem:[%s221_s27] sm:$0xff] %v529_v25   ;;  %547 = vst [vmem:[%s221_s27 + $0x10] sm:$0xff] %v539_v26  }
  0xef PF: > { %s13_s14 = sadd.s32 1, %s618_s14   ;;  %s683_s12 = smov %s614_s13 }
  0xf0   : > { %p10_p5 = scmp.ge.s32.totalorder %s13_s14, 4   ;;  %s684_s13 = smov %s686_s15 }
  0xf2   :  { %12 = sbr.rel (!%p10_p5) target bundleno = 2 (0x2), region = 68 }

// kernel: basic_block_forward.3
= control target key start
LH: loop header
LB: loop body
LE: loop exit
PB: predicated region body
PF: predicated region fallthrough
CT: control target
= control target key end

     0   :  { %s2433_s12 = smov 0   ;;  %s2435_s13 = smov 0   ;;  %s2801_s0 = inlined_call_operand.vmem [shape: bf16[2,4,91,4], index: 0, kind: input, shape index: {}]   ;;  %s2802_s1 = inlined_call_operand.vmem [shape: bf16[9,4,128], index: 1, kind: input, shape index: {}]   ;;  %s2803_s2 = inlined_call_operand.vmem [shape: f32[1,128], index: 2, kind: input, shape index: {}]   ;;  %s2804_s3 = inlined_call_operand.vmem [shape: bf16[2,81,128], index: 3, kind: output, shape index: {}]  }
   0x1   :  { %s2437_s14 = smov 0  }
   0x2 LB: > { %s25_s15 = sadd.s32 1, %s2407_s13  ;;  %p1859_p0 = scmp.ge.s32.totalorder %s2411_s14, 1  ;;  %s2411_s14 = sphi %s2437_s14, %s13_s14   ;;  %s2407_s13 = sphi %s2435_s13, %s2806_s13   ;;  %s2403_s12 = sphi %s2433_s12, %s2805_s12  }
   0x3   : > { %p27_p1 = scmp.ge.s32.totalorder %s25_s15, 2  ;;  %p168_p2 = scmp.lt.s32.totalorder %s2411_s14, 3 }
   0x5   : > { %s2808_s15 = smov (%p27_p1, %s25_s15), 0  ;;  %p169_p3 = pnand %p1859_p0, %p168_p2 }
   0x6   : > { %v1873_v0 = vld [vmem:[%s2802_s1 + $0x2] sm:$0x3] (!%p169_p3)  ;;  %vm296_vm0 = vcmask (!%p169_p3), 1041408   ;;  %v2457_v1 = vld [vmem:[%s2802_s1 + $0x8] sm:$0x3] (!%p169_p3)  ;;  %p202_p4 = scmp.lt.s32.totalorder (!%p169_p3), %s2403_s12, 1 }
   0x7   : > { %172 = sbr.rel (%p169_p3) target bundleno = 356 (0x164), region = 32  ;;  %2315 = vmatprep.subr.msk.bf16.mxu1 (!%p169_p3), %vm296_vm0, %v1873_v0  ;;  %v298_v2 = vsel (!%p169_p3), %vm296_vm0, %v1873_v0, 0  ;;  %2319 = vmatprep.subr.msk.bf16.mxu0 (!%p169_p3), %vm296_vm0, %v2457_v1  ;;  %v2465_v3 = vsel (!%p169_p3), %vm296_vm0, %v2457_v1, 0  ;;  %v234_v4 = vld [vmem:[%s2802_s1] sm:$0x3] (!%p169_p3)  ;;  %vm277_vm1 = vcmask (!%p169_p3), 31744  }
   0x8   : > { %2124 = vmatpush3.bf16.msra.mxu1 (!%p169_p3), %v298_v2  ;;  %2180 = vmatpush3.bf16.msra.mxu0 (!%p169_p3), %v2465_v3  ;;  %v1953_v5 = vld [vmem:[%s2802_s1 + $0xa] sm:$0x3] (!%p169_p3)  ;;  %v427_v9 = vsel (!%p169_p3), %vm296_vm0, %v234_v4, 0  ;;  %v2492_v10 = vld [vmem:[%s2802_s1 + $0x4] sm:$0x3] (!%p169_p3)  ;;  %vm1534_vm3 = vcmask (!%p169_p3), 1046528  }
   0x9   : > { %2316 = vmatprep.subr.msk.bf16.mxu1 (!%p169_p3), %vm296_vm0, %v234_v4  ;;  %2321 = vmatprep.subr.msk.bf16.mxu0 (!%p169_p3), %vm296_vm0, %v1953_v5  ;;  %v1960_v11 = vld [vmem:[%s2802_s1 + $0xc] sm:$0x3] (!%p169_p3)  ;;  %v1033_v13 = vsel (!%p169_p3), %vm296_vm0, %v1953_v5, 0  ;;  %vm511_vm2 = vsmask.f32 (!%p169_p3), 7424  ;;  %v571_v2 = vsel (!%p169_p3), %vm296_vm0, %v2492_v10, 0 }
   0xa   : > { %v1232_v37 = vsel (!%p169_p3), %vm296_vm0, %v1960_v11, 0  ;;  %v2539_v38 = vld [vmem:[%s2802_s1 + $0xe] sm:$0x3] (!%p169_p3)  ;;  %vm1742_vm4 = vcmask (!%p169_p3), 1040384   ;;  %vm1743_vm5 = vsmask.f32 (!%p169_p3), 256 }
   0xb   : > { %vm1744_vm6 = vmand (!%p169_p3), %vm1742_vm4, %vm1743_vm5 }
   0xe   : > { %s2810_s12 = smov (!%p202_p4, %s2403_s12), 1 }
   0xf   : > { %s2325_s24 = smul.u32 192, %s2810_s12 }
  0x10   : > { %s2326_s17 = smul.u32 44, %s2810_s12 }
  0x11   : > { %s2482_s27 = scalar_lea.vmem %s2801_s0, %s2325_s24 }
  0x12   : > { %v2351_v6 = vld [vmem:[%s2482_s27 + $0x30] sm:$0xff]   ;;  %v2353_v8 = vld [vmem:[%s2482_s27 + $0x38] sm:$0xff]   ;;  %v2355_v14 = vld [vmem:[%s2482_s27 + $0x40] sm:$0xff]   ;;  %s2767_s20 = scalar_lea.vmem %s2804_s3, %s2326_s17 }
  0x13   : > { %v2352_v7 = vld [vmem:[%s2482_s27 + $0x90] sm:$0xff]   ;;  %2125 = vmatprep.mubr.msk.bf16.mxu1 %vm277_vm1, %v2351_v6  ;;  %v2354_v12 = vld [vmem:[%s2482_s27 + $0x98] sm:$0xff]   ;;  %v2356_v15 = vld [vmem:[%s2482_s27 + $0x48] sm:$0xff]  }
  0x14   : > { %2181 = vmatprep.mubr.msk.bf16.mxu0 %vm277_vm1, %v2352_v7  ;;  %2126 = vmatmul.mubr.msk.bf16.vlgmr.msra.gmra.mrb[0].mxu1 %vm277_vm1, %v2353_v8  ;;  %v2506_v16 = vld [vmem:[%s2482_s27 + $0x60] sm:$0xff]   ;;  %v2509_v17 = vld [vmem:[%s2482_s27 + $0x68] sm:$0xff]   ;;  %v2515_v18 = vld [vmem:[%s2482_s27 + $0x70] sm:$0xff]  }
  0x15   : > { %2138 = vmatpush3.bf16.msra.mxu1 %v427_v9  ;;  %2182 = vmatmul.mubr.msk.bf16.vlgmr.msra.gmra.mrb[0].mxu0 %vm277_vm1, %v2354_v12  ;;  %v974_v19 = vshrl.u32 %v2506_v16, 16  ;;  %v976_v20 = vshll.u32 %v2506_v16, 16  ;;  %v980_v21 = vshll.u32 %v2509_v17, 16  ;;  %v984_v22 = vshrl.u32 %v2509_v17, 16  ;;  %v2360_v24 = vld [vmem:[%s2482_s27 + $0x50] sm:$0xff]   ;;  %v2524_v27 = vld [vmem:[%s2482_s27 + $0x78] sm:$0xff]  }
  0x16   : > { %2129 = vmatprep.mubr.msk.bf16.mxu1 %vm277_vm1, %v2355_v14  ;;  %2194 = vmatpush3.bf16.msra.mxu0 %v1033_v13  ;;  %v987_v23 = vshll.u32 %v2515_v18, 16  ;;  %v991_v29 = vshrl.u32 %v2515_v18, 16  ;;  %v994_v32 = vshll.u32 %v2524_v27, 16  ;;  %v2531_v33 = vld [vmem:[%s2482_s27 + $0x80] sm:$0xff]   ;;  %v998_v36 = vshrl.u32 %v2524_v27, 16  ;;  %v2567_v55 = vld [vmem:[%s2482_s27 + $0xc] sm:$0xff]  }
  0x17   : > { %2317 = vmatprep.subr.msk.bf16.mxu1 %vm296_vm0, %v2492_v10  ;;  %2322 = vmatprep.subr.msk.bf16.mxu0 %vm296_vm0, %v1960_v11  ;;  %v978_v25 = vrot.slane %v976_v20, 1  ;;  %v982_v26 = vrot.slane %v980_v21, 1  ;;  %v2361_v34 = vld [vmem:[%s2482_s27 + $0x58] ss:$0 sps:$4 sm:$0x11]   ;;  %v1001_v42 = vshll.u32 %v2531_v33, 16 }
  0x18   : > { %v989_v28 = vrot.slane %v987_v23, 1  ;;  %v996_v41 = vrot.slane %v994_v32, 1  ;;  %v2546_v43 = vld [vmem:[%s2482_s27] sm:$0xff]   ;;  %v2549_v44 = vld [vmem:[%s2482_s27 + $0x88] ss:$0 sps:$4 sm:$0x11]  }
  0x19   : > { %v979_v30 = vor.u32 %v978_v25, %v974_v19  ;;  %v986_v31 = vor.u32 %v984_v22, %v982_v26  ;;  %v1003_v46 = vrot.slane %v1001_v42, 1  ;;  %v1005_v47 = vshrl.u32 %v2531_v33, 16  ;;  %v1126_v51 = vld [vmem:[%s2482_s27 + $0x4] sm:$0xf]  ;;  %v2558_v52 = vld [vmem:[%s2482_s27 + $0x8] sm:$0xf] }
  0x1a   : > { %v993_v35 = vor.u32 %v991_v29, %v989_v28  ;;  %v1000_v48 = vor.u32 %v998_v36, %v996_v41  ;;  %v1008_v49 = vshll.u32 %v2549_v44, 16  ;;  %v1961_v54 = vcombine.low %v1126_v51, %v2558_v52  ;;  %v2573_v61 = vld [vmem:[%s2482_s27 + $0x8] sm:$0xff]   ;;  %v2577_v63 = vld [vmem:[%s2482_s27 + $0x10] sm:$0xff]   ;;  %v2586_v6 = vld [vmem:[%s2482_s27 + $0x1c] sm:$0xff]  }
  0x1b   : > { %v983_v39 = vsel %vm511_vm2, %v979_v30, %v982_v26  ;;  %v990_v40 = vsel %vm511_vm2, %v986_v31, %v989_v28  ;;  %v1007_v50 = vor.u32 %v1005_v47, %v1003_v46  ;;  %v1175_v60 = vshll.u32 %v2567_v55, 16  ;;  %v2580_v0 = vld [vmem:[%s2482_s27 + $0x14] sm:$0xff]   ;;  %v2591_v7 = vld [vmem:[%s2802_s1 + $0x6] sm:$0x3] }
  0x1c   : > { %2130 = vmatmul.mubr.msk.bf16.gmra.mrb[4].mxu1 %vm277_vm1, %v2356_v15  ;;  %2195 = vmatprep.mubr.msk.bf16.mxu0 %vm277_vm1, %v983_v39  ;;  %v997_v45 = vsel %vm511_vm2, %v993_v35, %v996_v41  ;;  %v1010_v53 = vrot.slane %v1008_v49, 1  ;;  %v1004_v56 = vsel %vm511_vm2, %v1000_v48, %v1003_v46  ;;  %v1170_v57 = vshll.u32 %v1961_v54, 16  ;;  %v2604_v12 = vld [vmem:[%s2482_s27 + $0x18] sm:$0xff]   ;;  %v2610_v19 = vld [vmem:[%s2482_s27 + $0x20] sm:$0xff]   ;;  %v2635_v39 = vld [vmem:[%s2802_s1 + $0x10] sm:$0x3] }
  0x1d   : > { %2133 = vmatprep.mubr.msk.bf16.mxu1 %vm277_vm1, %v2360_v24  ;;  %v1168_v59 = vshrl.u32 %v1961_v54, 16  ;;  %v1177_v5 = vrot.slane %v1175_v60, 1  ;;  %v1012_v8 = vshrl.u32 %v2549_v44, 16  ;;  %v1183_v9 = vshll.u32 %v2580_v0, 16  ;;  %v2614_v21 = vld [vmem:[%s2482_s27 + $0x24] sm:$0xff]   ;;  %v2378_v54 = vld [vmem:[%s2482_s27 + $0x3c] sm:$0xff]  }
  0x1e   : > { %v1011_v58 = vsel %vm511_vm2, %v1007_v50, %v1010_v53  ;;  %v1172_v62 = vrot.slane %v1170_v57, 1  ;;  %v1179_v10 = vshrl.u32 %v2567_v55, 16  ;;  %v514_v11 = vshll.u32 %v2546_v43, 16  ;;  %v2620_v29 = vld [vmem:[%s2482_s27 + $0x2c] ss:$0 sps:$4 sm:$0x11]  }
  0x1f   : > { %v1187_v14 = vshrl.u32 %v2580_v0, 16  ;;  %v1191_v15 = vshll.u32 %v2586_v6, 16  ;;  %v1185_v20 = vrot.slane %v1183_v9, 1  ;;  %v512_v23 = vshrl.u32 %v2546_v43, 16 }
  0x20   : > { %v1173_v4 = vor.u32 %v1172_v62, %v1168_v59  ;;  %v1181_v22 = vor.u32 %v1179_v10, %v1177_v5  ;;  %v516_v24 = vrot.slane %v514_v11, 1  ;;  %v518_v25 = vshll.u32 %v2573_v61, 16  ;;  %v2379_v10 = vld [vmem:[%s2482_s27 + $0x44] sm:$0xff]  }
  0x21   : > { %2196 = vmatmul.mubr.msk.bf16.vlgmr.msra.gmra.mrb[0].mxu0 %vm277_vm1, %v990_v40  ;;  %v1189_v26 = vor.u32 %v1187_v14, %v1185_v20  ;;  %v1193_v28 = vrot.slane %v1191_v15, 1  ;;  %v1199_v30 = vshll.u32 %v2614_v21, 16  ;;  %v1431_v31 = vsel %vm296_vm0, %v2539_v38, 0 }
  0x22   : > { %2199 = vmatprep.mubr.msk.bf16.mxu0 %vm277_vm1, %v997_v45  ;;  %2208 = vmatpush3.bf16.msra.mxu0 %v1232_v37  ;;  %v1178_v13 = vsel %vm511_vm2, %v1173_v4, %v1177_v5  ;;  %v1186_v32 = vsel %vm511_vm2, %v1181_v22, %v1185_v20  ;;  %v517_v35 = vor.u32 %v516_v24, %v512_v23  ;;  %v520_v36 = vrot.slane %v518_v25, 1  ;;  %v2377_v37 = vld [vmem:[%s2482_s27 + $0x34] sm:$0xff]   ;;  %v2380_v23 = vld [vmem:[%s2482_s27 + $0x4c] sm:$0xff]  }
  0x23   : > { %2323 = vmatprep.subr.msk.bf16.mxu0 %vm296_vm0, %v2539_v38  ;;  %v1194_v40 = vsel %vm511_vm2, %v1189_v26, %v1193_v28  ;;  %v1203_v41 = vshrl.u32 %v2614_v21, 16  ;;  %v1207_v42 = vshll.u32 %v2620_v29, 16  ;;  %v525_v38 = vshll.u32 %v2577_v63, 16 }
  0x24   : > { %2134 = vmatmul.mubr.msk.bf16.gmra.mrb[8].mxu1 %vm277_vm1, %v2361_v34  ;;  %v1195_v34 = vshrl.u32 %v2586_v6, 16  ;;  %v1201_v45 = vrot.slane %v1199_v30, 1  ;;  %v522_v46 = vshrl.u32 %v2573_v61, 16  ;;  %v521_v48 = vsel %vm511_vm2, %v517_v35, %v520_v36  ;;  %v2381_v35 = vld [vmem:[%s2482_s27 + $0x54] sm:$0xff]  }
  0x25   : > { %2139 = vmatprep.mubr.msk.bf16.mxu1 %vm277_vm1, %v2546_v43  ;;  %v2642_v43 = vld [vmem:[%s2482_s27 + $0x28] ss:$0 sps:$4 sm:$0x11]   ;;  %v529_v49 = vshrl.u32 %v2577_v63, 16  ;;  %v532_v50 = vshll.u32 %v2604_v12, 16  ;;  %v1209_v53 = vrot.slane %v1207_v42, 1 }
  0x26   : > { %v1197_v47 = vor.u32 %v1195_v34, %v1193_v28  ;;  %v1205_v51 = vor.u32 %v1203_v41, %v1201_v45  ;;  %v527_v57 = vrot.slane %v525_v38, 1  ;;  %v1374_v4 = vshll.u32 %v2378_v54, 16  ;;  %v2382_v42 = vld [vmem:[%s2482_s27 + $0x5c] ss:$0 sps:$4 sm:$0x11]  }
  0x27   : > { %v539_v5 = vshll.u32 %v2610_v19, 16  ;;  %v536_v9 = vshrl.u32 %v2604_v12, 16  ;;  %v725_v11 = vsel %vm296_vm0, %v2591_v7, 0  ;;  %v543_v14 = vshrl.u32 %v2610_v19, 16 }
  0x28   : > { %v1202_v59 = vsel %vm511_vm2, %v1197_v47, %v1201_v45  ;;  %v531_v60 = vor.u32 %v529_v49, %v527_v57  ;;  %v1210_v62 = vsel %vm511_vm2, %v1205_v51, %v1209_v53  ;;  %v546_v15 = vshll.u32 %v2642_v43, 16 }
  0x29   : > { %2200 = vmatmul.mubr.msk.bf16.gmra.mrb[4].mxu0 %vm277_vm1, %v1004_v56  ;;  %v1369_v56 = vshll.u32 %v2377_v37, 16  ;;  %v1376_v22 = vrot.slane %v1374_v4, 1  ;;  %v541_v24 = vrot.slane %v539_v5, 1  ;;  %v1382_v25 = vshll.u32 %v2379_v10, 16 }
  0x2a   : > { %2203 = vmatprep.mubr.msk.bf16.mxu0 %vm277_vm1, %v1011_v58  ;;  %v524_v58 = vor.u32 %v522_v46, %v520_v36  ;;  %v1378_v26 = vshrl.u32 %v2378_v54, 16  ;;  %v1394_v45 = vshrl.u32 %v2380_v23, 16  ;;  %v1565_v47 = vsel %vm296_vm0, %v2635_v39, 0 }
  0x2b   : > { %v545_v28 = vor.u32 %v543_v14, %v541_v24  ;;  %v1406_v49 = vshll.u32 %v2382_v42, 16 }
  0x2c   : > { %2140 = vmatmul.mubr.msk.bf16.vlgmr.msra.gmra.mrb[0].mxu1 %vm277_vm1, %v2573_v61  ;;  %v534_v61 = vrot.slane %v532_v50, 1  ;;  %v1380_v36 = vor.u32 %v1378_v26, %v1376_v22  ;;  %v550_v50 = vshrl.u32 %v2642_v43, 16 }
  0x2d   : > { %2152 = vmatpush3.bf16.msra.mxu1 %v571_v2  ;;  %2143 = vmatprep.mubr.msk.bf16.mxu1 %vm277_vm1, %v2577_v63  ;;  %v1367_v63 = vshrl.u32 %v2377_v37, 16  ;;  %v1371_v2 = vrot.slane %v1369_v56, 1  ;;  %v1408_v56 = vrot.slane %v1406_v49, 1 }
  0x2e   : > { %2318 = vmatprep.subr.msk.bf16.mxu1 %vm296_vm0, %v2591_v7  ;;  %v538_v7 = vor.u32 %v536_v9, %v534_v61 }
  0x2f   : > { %v1372_v20 = vor.u32 %v1371_v2, %v1367_v63  ;;  %v2385_v63 = vld [vmem:[%s2482_s27 + $0xa8] sm:$0xff]   ;;  %v2386_v2 = vld [vmem:[%s2482_s27 + $0xb0] sm:$0xff]  }
  0x30   : > { %v542_v34 = vsel %vm511_vm2, %v538_v7, %v541_v24 }
  0x31   : > { %2204 = vmatmul.mubr.msk.bf16.gmra.mrb[8].mxu0 %vm277_vm1, %v1012_v8  ;;  %v528_v8 = vsel %vm511_vm2, %v524_v58, %v527_v57  ;;  %v1377_v30 = vsel %vm511_vm2, %v1372_v20, %v1376_v22  ;;  %v1524_v57 = vld [vmem:[%s2482_s27 + $0x4] sm:$0xe] }
  0x32   : > { %2209 = vmatprep.mubr.msk.bf16.mxu0 %vm277_vm1, %v1178_v13  ;;  %v535_v13 = vsel %vm511_vm2, %v531_v60, %v534_v61  ;;  %v1536_v60 = vrot.slane %v2567_v55, 1  ;;  %v1538_v61 = vrot.slane %v2580_v0, 1  ;;  %v1540_v55 = vrot.slane %v2586_v6, 1 }
  0x33   : > { %v1542_v0 = vrot.slane %v2614_v21, 1  ;;  %v2387_v21 = vld [vmem:[%s2482_s27 + $0xb8] ss:$0 sps:$4 sm:$0x11]  }
  0x34   : > { %2144 = vmatmul.mubr.msk.bf16.gmra.mrb[4].mxu1 %vm277_vm1, %v2604_v12  ;;  %v1211_v12 = vshrl.u32 %v2620_v29, 16  ;;  %v1384_v29 = vrot.slane %v1382_v25, 1 }
  0x35   : > { %2147 = vmatprep.mubr.msk.bf16.mxu1 %vm277_vm1, %v2610_v19  ;;  %v548_v19 = vrot.slane %v546_v15, 1 }
  0x36   : > { %v1385_v38 = vsel %vm511_vm2, %v1380_v36, %v1384_v29 }
  0x37   : > { %v549_v37 = vsel %vm511_vm2, %v545_v28, %v548_v19 }
  0x39   : > { %2210 = vmatmul.mubr.msk.bf16.vlgmr.msra.gmra.mrb[0].mxu0 %vm277_vm1, %v1186_v32  ;;  %v1390_v32 = vshll.u32 %v2380_v23, 16 }
  0x3a   : > { %2213 = vmatprep.mubr.msk.bf16.mxu0 %vm277_vm1, %v1194_v40  ;;  %2222 = vmatpush3.bf16.msra.mxu0 %v1431_v31  ;;  %v1386_v31 = vshrl.u32 %v2379_v10, 16 }
  0x3b   : > { %2324 = vmatprep.subr.msk.bf16.mxu0 %vm296_vm0, %v2635_v39  ;;  %v1392_v41 = vrot.slane %v1390_v32, 1 }
  0x3c   : > { %2148 = vmatmul.mubr.msk.bf16.gmra.mrb[12].mxu1 %vm277_vm1, %v2642_v43  ;;  %v1388_v40 = vor.u32 %v1386_v31, %v1384_v29  ;;  %v1998_v43 = vcombine.low %v1524_v57, %v2558_v52 }
  0x3d   : > { %2153 = vmatprep.mubr.msk.bf16.mxu1 %vm277_vm1, %v521_v48  ;;  %v1402_v48 = vshrl.u32 %v2381_v35, 16  ;;  %v1396_v53 = vor.u32 %v1394_v45, %v1392_v41 }
  0x3e   : > { %v1393_v46 = vsel %vm511_vm2, %v1388_v40, %v1392_v41 }
  0x41   : > { %2214 = vmatmul.mubr.msk.bf16.gmra.mrb[4].mxu0 %vm277_vm1, %v1202_v59  ;;  %v1535_v59 = vrot.slane %v1998_v43, 1 }
  0x42   : > { %2217 = vmatprep.mubr.msk.bf16.mxu0 %vm277_vm1, %v1210_v62  ;;  %v2384_v62 = vld [vmem:[%s2482_s27 + $0xa0] sm:$0xff]  }
  0x43   : > { %v1537_v52 = vsel %vm1534_vm3, %v1535_v59, %v1536_v60 }
  0x44   : > { %2154 = vmatmul.mubr.msk.bf16.vlgmr.msra.gmra.mrb[0].mxu1 %vm277_vm1, %v528_v8 }
  0x45   : > { %2166 = vmatpush3.bf16.msra.mxu1 %v725_v11  ;;  %2157 = vmatprep.mubr.msk.bf16.mxu1 %vm277_vm1, %v535_v13 }
  0x46   : > { %2320 = vmatprep.subr.msk.bf16.mxu1 %vm296_vm0, %v2457_v1  ;;  %v1398_v1 = vshll.u32 %v2381_v35, 16 }
  0x48   : > { %v1400_v51 = vrot.slane %v1398_v1, 1 }
  0x49   : > { %2218 = vmatmul.mubr.msk.bf16.gmra.mrb[12].mxu0 %vm277_vm1, %v1211_v12 }
  0x4a   : > { %2223 = vmatprep.mubr.msk.bf16.mxu0 %vm277_vm1, %v1377_v30  ;;  %v1404_v54 = vor.u32 %v1402_v48, %v1400_v51  ;;  %v1401_v39 = vsel %vm511_vm2, %v1396_v53, %v1400_v51 }
  0x4c   : > { %2158 = vmatmul.mubr.msk.bf16.gmra.mrb[4].mxu1 %vm277_vm1, %v542_v34  ;;  %v1409_v58 = vsel %vm511_vm2, %v1404_v54, %v1408_v56 }
  0x4d   : > { %2161 = vmatprep.mubr.msk.bf16.mxu1 %vm277_vm1, %v549_v37 }
  0x51   : > { %2224 = vmatmul.mubr.msk.bf16.vlgmr.msra.gmra.mrb[0].mxu0 %vm277_vm1, %v1385_v38 }
  0x52   : > { %2227 = vmatprep.mubr.msk.bf16.mxu0 %vm277_vm1, %v1393_v46  ;;  %2236 = vmatpush3.bf16.msra.mxu0 %v1565_v47  ;;  %v2757_v47 = vld [vmem:[%s2803_s2] ss:$0 sm:$0xff] }
  0x54   : > { %2162 = vmatmul.mubr.msk.bf16.gmra.mrb[16].mxu1 %vm277_vm1, %v550_v50 }
  0x55   : > { %2167 = vmatprep.mubr.msk.bf16.mxu1 %vm277_vm1, %v2506_v16  ;;  %v1410_v16 = vshrl.u32 %v2382_v42, 16 }
  0x59   : > { %2228 = vmatmul.mubr.msk.bf16.gmra.mrb[4].mxu0 %vm277_vm1, %v1401_v39 }
  0x5a   : > { %2231 = vmatprep.mubr.msk.bf16.mxu0 %vm277_vm1, %v1409_v58 }
  0x5c   : > { %2168 = vmatmul.mubr.msk.bf16.vlgmr.msra.gmra.mrb[0].mxu1 %vm277_vm1, %v2509_v17  ;;  %v1541_v17 = vsel %vm1534_vm3, %v1538_v61, %v1540_v55 }
  0x5d   : > { %2250 = vmatpush3.bf16.msra.mxu1 %v2465_v3  ;;  %2171 = vmatprep.mubr.msk.bf16.mxu1 %vm277_vm1, %v2515_v18  ;;  %v1539_v3 = vsel %vm1534_vm3, %v1536_v60, %v1538_v61  ;;  %v2388_v18 = vld [vmem:[%s2482_s27 + $0x2c] ss:$0 sps:$4 sm:$0x33]  }
  0x5e   : > { %v1544_v6 = vrot.slane %v2388_v18, 1 }
  0x61   : > { %2232 = vmatmul.mubr.msk.bf16.gmra.mrb[16].mxu0 %vm277_vm1, %v1410_v16 }
  0x62   : > { %2237 = vmatprep.mubr.msk.bf16.mxu0 %vm277_vm1, %v1537_v52 }
  0x64   : > { %2172 = vmatmul.mubr.msk.bf16.gmra.mrb[4].mxu1 %vm277_vm1, %v2524_v27  ;;  %v1543_v27 = vsel %vm1534_vm3, %v1540_v55, %v1542_v0 }
  0x65   : > { %2175 = vmatprep.mubr.msk.bf16.mxu1 %vm277_vm1, %v2531_v33  ;;  %v1545_v33 = vsel %vm1534_vm3, %v1542_v0, %v1544_v6 }
  0x69   : > { %2238 = vmatmul.mubr.msk.bf16.vlgmr.msra.gmra.mrb[0].mxu0 %vm277_vm1, %v1539_v3 }
  0x6a   : > { %2241 = vmatprep.mubr.msk.bf16.mxu0 %vm277_vm1, %v1541_v17 }
  0x6c   : > { %2176 = vmatmul.mubr.msk.bf16.gmra.mrb[20].mxu1 %vm277_vm1, %v2549_v44 }
  0x6d   : > { %2185 = vmatprep.mubr.msk.bf16.mxu1 %vm277_vm1, %v2384_v62 }
  0x71   : > { %2242 = vmatmul.mubr.msk.bf16.gmra.mrb[4].mxu0 %vm277_vm1, %v1543_v27 }
  0x72   : > { %2245 = vmatprep.mubr.msk.bf16.mxu0 %vm277_vm1, %v1545_v33 }
  0x74   : > { %2186 = vmatmul.mubr.msk.bf16.vlgmr.msra.gmra.mrb[4].mxu1 %vm277_vm1, %v2385_v63 }
  0x75   : > { %2189 = vmatprep.mubr.msk.bf16.mxu1 %vm277_vm1, %v2386_v2 }
  0x79   : > { %2246 = vmatmul.mubr.msk.bf16.gmra.mrb[20].mxu0 %vm277_vm1, %v1544_v6 }
  0x7c   : > { %2190 = vmatmul.mubr.msk.bf16.gmra.mrb[24].mxu1 %vm277_vm1, %v2387_v21 }
  0xf7   : > { %v2135_v44 = vpop.f32.mrb[8].mxu1 }
  0xf8   : > { %v366_v4 = vpop.f32.mrb[9].mxu1 }
  0xf9   : > { %v2136_v5 = vpop.f32.mrb[10].mxu1 }
  0xfa   : > { %v369_v8 = vpop.f32.mrb[11].mxu1 }
 0x104   : > { %v2736_v9 = vpop.f32.mrb[8].mxu0 }
 0x105   : > { %v2738_v10 = vpop.f32.mrb[9].mxu0 }
 0x106   : > { %v2206_v11 = vpop.f32.mrb[10].mxu0 }
 0x107   : > { %v2740_v13 = vpop.f32.mrb[11].mxu0 }
 0x10f   : > { %v2149_v14 = vpop.f32.mrb[12].mxu1 }
 0x110   : > { %v504_v15 = vadd.f32 %v2149_v14, %v2135_v44  ;;  %v495_v20 = vpop.f32.mrb[13].mxu1 }
 0x111   : > { %v496_v22 = vadd.f32 %v495_v20, %v366_v4  ;;  %v2150_v23 = vpop.f32.mrb[14].mxu1 }
 0x112   : > { %v498_v24 = vpop.f32.mrb[15].mxu1 }
 0x113   : > { %v499_v12 = vadd.f32 %v498_v24, %v369_v8 }
 0x11c   : > { %v2742_v7 = vpop.f32.mrb[12].mxu0 }
 0x11d   : > { %v2744_v25 = vpop.f32.mrb[13].mxu0 }
 0x11e   : > { %v2220_v26 = vpop.f32.mrb[14].mxu0 }
 0x11f   : > { %v2746_v28 = vpop.f32.mrb[15].mxu0 }
 0x127   : > { %v2163_v19 = vpop.f32.mrb[16].mxu1 }
 0x128   : > { %v663_v30 = vadd.f32 %v2163_v19, %v504_v15  ;;  %v639_v31 = vpop.f32.mrb[17].mxu1 }
 0x129   : > { %v661_v32 = vadd.f32 %v639_v31, %v496_v22  ;;  %v2164_v34 = vpop.f32.mrb[18].mxu1 }
 0x12a   : > { %v642_v29 = vpop.f32.mrb[19].mxu1 }
 0x12b   : > { %v662_v35 = vadd.f32 %v642_v29, %v499_v12 }
 0x12f   : > { %v2169_v36 = vpop.f32.mrb[0].mxu1 }
 0x130   : > { %v761_v37 = vpop.f32.mrb[1].mxu1 }
 0x131   : > { %v2170_v40 = vpop.f32.mrb[2].mxu1 }
 0x132   : > { %v764_v41 = vpop.f32.mrb[3].mxu1 }
 0x134   : > { %v2748_v42 = vpop.f32.mrb[16].mxu0 }
 0x135   : > { %v2750_v1 = vpop.f32.mrb[17].mxu0 }
 0x136   : > { %v2234_v38 = vpop.f32.mrb[18].mxu0 }
 0x137   : > { %v2752_v45 = vpop.f32.mrb[19].mxu0 }
 0x13c   : > { %v2239_v46 = vpop.f32.mrb[0].mxu0 }
 0x13d   : > { %v2251_v48 = vadd.f32 %v2239_v46, %v2169_v36  ;;  %v1601_v49 = vpop.f32.mrb[1].mxu0 }
 0x13e   : > { %v2252_v50 = vadd.f32 %v1601_v49, %v761_v37  ;;  %v2240_v51 = vpop.f32.mrb[2].mxu0 }
 0x13f   : > { %v1667_v53 = vadd.f32 %v2251_v48, %v2757_v47  ;;  %v2253_v54 = vadd.f32 %v2240_v51, %v2170_v40  ;;  %v1604_v56 = vpop.f32.mrb[3].mxu0  ;;  %v2177_v57 = vpop.f32.mrb[20].mxu1 }
 0x140   : > { %v1665_v39 = vadd.f32 %v2252_v50, %v2757_v47  ;;  %v2254_v58 = vadd.f32 %v1604_v56, %v764_v41  ;;  %v817_v43 = vadd.f32 %v2177_v57, %v663_v30  ;;  %v793_v59 = vpop.f32.mrb[21].mxu1 }
 0x141   : > { %v1668_v60 = vadd.f32 %v2253_v54, %v2757_v47  ;;  %v815_v16 = vadd.f32 %v793_v59, %v661_v32  ;;  %v2178_v52 = vpop.f32.mrb[22].mxu1  ;;  %v1678_v3 = vmax.f32 %v1667_v53, 0.0 }
 0x142   : > { %v1666_v61 = vadd.f32 %v2254_v58, %v2757_v47  ;;  %v796_v55 = vpop.f32.mrb[23].mxu1  ;;  %v1676_v62 = vmax.f32 %v1665_v39, 0.0 }
 0x143   : > { %v1679_v17 = vmax.f32 %v1668_v60, 0.0  ;;  %v816_v18 = vadd.f32 %v796_v55, %v662_v35 }
 0x144   : > { %v1677_v0 = vmax.f32 %v1666_v61, 0.0  ;;  %v2243_v6 = vpop.f32.mrb[4].mxu0 }
 0x145   : > { %v2039_v27 = vpack.c.bf16 %v1679_v17, %v1678_v3  ;;  %v1617_v33 = vpop.f32.mrb[5].mxu0 }
 0x146   : > { %v2034_v63 = vpack.c.bf16 %v1677_v0, %v1676_v62  ;;  %v2244_v2 = vpop.f32.mrb[6].mxu0 }
 0x147   : > { %2056 = vst [vmem:[%s2767_s20 + $0x8] sm:$0xff] %v2039_v27   ;;  %v1620_v21 = vpop.f32.mrb[7].mxu0  ;;  %v2187_v44 = vpop.f32.mrb[4].mxu1 }
 0x148   : > { %2035 = vst [vmem:[%s2767_s20] sm:$0xff] %v2034_v63   ;;  %v2255_v4 = vadd.f32 %v2243_v6, %v2187_v44  ;;  %v931_v5 = vpop.f32.mrb[5].mxu1 }
 0x149   : > { %v2256_v8 = vadd.f32 %v1617_v33, %v931_v5  ;;  %v2188_v11 = vpop.f32.mrb[6].mxu1 }
 0x14a   : > { %v1671_v14 = vadd.f32 %v2255_v4, %v2757_v47  ;;  %v2257_v15 = vadd.f32 %v2244_v2, %v2188_v11  ;;  %v934_v20 = vpop.f32.mrb[7].mxu1 }
 0x14b   : > { %v1669_v22 = vadd.f32 %v2256_v8, %v2757_v47  ;;  %v2258_v23 = vadd.f32 %v1620_v21, %v934_v20 }
 0x14c   : > { %v1672_v24 = vadd.f32 %v2257_v15, %v2757_v47  ;;  %v2247_v12 = vpop.f32.mrb[20].mxu0  ;;  %v1682_v30 = vmax.f32 %v1671_v14, 0.0 }
 0x14d   : > { %v1670_v26 = vadd.f32 %v2258_v23, %v2757_v47  ;;  %v1633_v19 = vpop.f32.mrb[21].mxu0  ;;  %v1680_v34 = vmax.f32 %v1669_v22, 0.0 }
 0x14e   : > { %v1683_v31 = vmax.f32 %v1672_v24, 0.0  ;;  %v2248_v32 = vpop.f32.mrb[22].mxu0 }
 0x14f   : > { %v1681_v29 = vmax.f32 %v1670_v26, 0.0  ;;  %v2191_v35 = vpop.f32.mrb[24].mxu1  ;;  %v1636_v36 = vpop.f32.mrb[23].mxu0 }
 0x150   : > { %v2049_v37 = vpack.c.bf16 %v1683_v31, %v1682_v30  ;;  %v971_v40 = vadd.f32 %v2191_v35, %v817_v43  ;;  %v947_v41 = vpop.f32.mrb[25].mxu1 }
 0x151   : > { %v2044_v38 = vpack.c.bf16 %v1681_v29, %v1680_v34  ;;  %v969_v46 = vadd.f32 %v947_v41, %v815_v16  ;;  %v2192_v48 = vpop.f32.mrb[26].mxu1 }
 0x152   : > { %2058 = vst [vmem:[%s2767_s20 + $0x18] sm:$0xff] %v2049_v37   ;;  %v1125_v49 = vadd.f32 %v2736_v9, %v971_v40  ;;  %v950_v50 = vpop.f32.mrb[27].mxu1 }
 0x153   : > { %2057 = vst [vmem:[%s2767_s20 + $0x10] sm:$0xff] %v2044_v38   ;;  %v1123_v51 = vadd.f32 %v2738_v10, %v969_v46  ;;  %v970_v53 = vadd.f32 %v950_v50, %v816_v18 }
 0x154   : > { %v1324_v54 = vadd.f32 %v2742_v7, %v1125_v49 }
 0x155   : > { %v1124_v56 = vadd.f32 %v2740_v13, %v970_v53  ;;  %v1322_v57 = vadd.f32 %v2744_v25, %v1123_v51 }
 0x156   : > { %v1523_v39 = vadd.f32 %v2748_v42, %v1324_v54  ;;  %v1745_v42 = vld [vmem:[%s2767_s20 + $0x28] sm:$0x1] }
 0x157   : > { %v1521_v58 = vadd.f32 %v2750_v1, %v1322_v57  ;;  %v1323_v43 = vadd.f32 %v2746_v28, %v1124_v56 }
 0x158   : > { %v1657_v59 = vadd.f32 %v2247_v12, %v1523_v39 }
 0x159   : > { %v1655_v9 = vadd.f32 %v1633_v19, %v1521_v58  ;;  %v1522_v60 = vadd.f32 %v2752_v45, %v1323_v43 }
 0x15a   : > { %v1675_v10 = vadd.f32 %v2757_v47, %v1657_v59 }
 0x15b   : > { %v1673_v13 = vadd.f32 %v2757_v47, %v1655_v9  ;;  %v1656_v7 = vadd.f32 %v1636_v36, %v1522_v60 }
 0x15c   : > { %v1686_v25 = vmax.f32 %v1675_v10, 0.0 }
 0x15d   : > { %v1674_v1 = vadd.f32 %v2757_v47, %v1656_v7  ;;  %v1684_v28 = vmax.f32 %v1673_v13, 0.0 }
 0x15e   : > { %v2030_v16 = vpack.c.bf16 %v1686_v25, %v1686_v25 }
 0x15f   : > { %v1685_v52 = vmax.f32 %v1674_v1, 0.0 }
 0x160   : > { %v1746_v61 = vsel %vm1744_vm6, %v2030_v16, %v1745_v42 }
 0x161   : > { %1747 = vst [vmem:[%s2767_s20 + $0x28] sm:$0x1] %v1746_v61  ;;  %v2054_v55 = vpack.c.bf16 %v1685_v52, %v1684_v28 }
 0x163   : > { %2059 = vst [vmem:[%s2767_s20 + $0x20] sm:$0xff] %v2054_v55  }
 0x164 PF: > { %s13_s14 = sadd.s32 1, %s2411_s14   ;;  %s2805_s12 = smov %s2407_s13 }
 0x165   : > { %p10_p5 = scmp.ge.s32.totalorder %s13_s14, 4   ;;  %s2806_s13 = smov %s2808_s15 }
 0x167   :  { %12 = sbr.rel (!%p10_p5) target bundleno = 2 (0x2), region = 79 }

// kernel: basic_block_forward.5
= control target key start
LH: loop header
LB: loop body
LE: loop exit
PB: predicated region body
PF: predicated region fallthrough
CT: control target
= control target key end

     0   :  { %s2662_s15 = smov 0   ;;  %s2664_s16 = smov 0   ;;  %s3304_s0 = inlined_call_operand.vmem [shape: bf16[2,1,122,8], index: 0, kind: input, shape index: {}]   ;;  %s3305_s1 = inlined_call_operand.vmem [shape: bf16[9,8,128], index: 1, kind: input, shape index: {}]   ;;  %s3306_s2 = inlined_call_operand.vmem [shape: f32[1,128], index: 2, kind: input, shape index: {}]   ;;  %s3307_s3 = inlined_call_operand.vmem [shape: bf16[2,100,128], index: 3, kind: input, shape index: {}]   ;;  %s3308_s4 = inlined_call_operand.vmem [shape: f32[2,100,128], index: 4, kind: output, shape index: {}]  }
   0x1   :  { %s2666_s17 = smov 0  }
   0x2 LB: > { %s26_s18 = sadd.s32 1, %s2629_s16  ;;  %p2064_p0 = scmp.ge.s32.totalorder %s2633_s17, 1  ;;  %s2633_s17 = sphi %s2666_s17, %s14_s17   ;;  %s2629_s16 = sphi %s2664_s16, %s3310_s16   ;;  %s2625_s15 = sphi %s2662_s15, %s3309_s15  }
   0x3   : > { %p28_p1 = scmp.ge.s32.totalorder %s26_s18, 2  ;;  %p208_p2 = scmp.lt.s32.totalorder %s2633_s17, 3 }
   0x5   : > { %s3312_s18 = smov (%p28_p1, %s26_s18), 0  ;;  %p209_p3 = pnand %p2064_p0, %p208_p2 }
   0x6   : > { %v2069_v0 = vld [vmem:[%s3305_s1 + $0x4] sm:$0xf] (!%p209_p3)  ;;  %vm409_vm0 = vcmask (!%p209_p3), 1043456   ;;  %p252_p4 = scmp.lt.s32.totalorder (!%p209_p3), %s2625_s15, 1  ;;  %v2635_v1 = vmov (!%p209_p3), 0.0   ;;  %vm2636_vm1 = vmmov (!%p209_p3), 0  }
   0x7   : > { %212 = sbr.rel (%p209_p3) target bundleno = 496 (0x1f0), region = 36  ;;  %2278 = vmatprep.subr.bf16.mxu0 (!%p209_p3), %v2635_v1  ;;  %2548 = vmatprep.subr.bf16.mxu1 (!%p209_p3), %v2635_v1  ;;  %v411_v2 = vsel (!%p209_p3), %vm409_vm0, %v2069_v0, 0  ;;  %vm331_vm2 = vsmask.f32 (!%p209_p3), 7424  ;;  %v2092_v13 = vld [vmem:[%s3305_s1 + $0x8] sm:$0xf] (!%p209_p3) }
   0x8   : > { %2279 = vmatpush3.bf16.msra.mxu0 (!%p209_p3), %v411_v2  ;;  %2549 = vmatpush3.bf16.msra.mxu1 (!%p209_p3), %v411_v2  ;;  %v294_v18 = vld [vmem:[%s3305_s1] sm:$0xf] (!%p209_p3)  ;;  %vm387_vm3 = vcmask (!%p209_p3), 64512   ;;  %v652_v26 = vsel (!%p209_p3), %vm409_vm0, %v2092_v13, 0  ;;  %v2101_v50 = vld [vmem:[%s3305_s1 + $0xc] sm:$0xf] (!%p209_p3) }
   0x9   : > { %2280 = vmatprep.mubr.msk.bf16.mxu0 (!%p209_p3), %vm2636_vm1, %v2635_v1  ;;  %2296 = vmatprep.mubr.msk.bf16.mxu1 (!%p209_p3), %vm2636_vm1, %v2635_v1  ;;  %v520_v31 = vsel (!%p209_p3), %vm409_vm0, %v294_v18, 0  ;;  %v838_v53 = vsel (!%p209_p3), %vm409_vm0, %v2101_v50, 0  ;;  %vm616_vm4 = vcmask (!%p209_p3), 1046528   ;;  %v2116_v56 = vld [vmem:[%s3305_s1 + $0x10] sm:$0xf] (!%p209_p3)  ;;  %vm1141_vm6 = vcmask (!%p209_p3), 1045504  }
   0xa   : > { %2338 = vmatprep.subr.bf16.mxu0 (!%p209_p3), %v2635_v1  ;;  %2308 = vmatprep.subr.bf16.mxu1 (!%p209_p3), %v2635_v1  ;;  %v1032_v58 = vsel (!%p209_p3), %vm409_vm0, %v2116_v56, 0  ;;  %vm947_vm5 = vsmask.f32 (!%p209_p3), 6400  ;;  %vm1517_vm7 = vsmask.f32 (!%p209_p3), 5376  ;;  %vm1711_vm8 = vcmask (!%p209_p3), 1044480  }
   0xe   : > { %s3314_s15 = smov (!%p252_p4, %s2625_s15), 1 }
   0xf   : > { %s2176_s21 = sshll.u32 %s3314_s15, 6  ;;  %s2550_s19 = smul.u32 52, %s3314_s15 }
  0x10   : > { %s2698_s24 = scalar_lea.vmem %s3304_s0, %s2176_s21  ;;  %s2551_s25 = smul.u32 104, %s3314_s15 }
  0x11   : > { %v281_v3 = vld [vmem:[%s2698_s24] sm:$0xf]  ;;  %v2702_v4 = vld [vmem:[%s2698_s24 + $0x4] sm:$0xf]  ;;  %v2708_v6 = vld [vmem:[%s2698_s24 + $0x8] sm:$0xff]   ;;  %s3237_s22 = scalar_lea.vmem %s3307_s3, %s2550_s19 }
  0x12   : > { %v2705_v5 = vcombine.low %v281_v3, %v2702_v4  ;;  %v340_v9 = vshll.u32 %v2708_v6, 16  ;;  %v2714_v10 = vld [vmem:[%s2698_s24 + $0x20] sm:$0xff]   ;;  %v2717_v11 = vld [vmem:[%s2698_s24 + $0x28] sm:$0xff]   ;;  %v2720_v12 = vld [vmem:[%s2698_s24 + $0x10] sm:$0xff]   ;;  %v344_v20 = vshrl.u32 %v2708_v6, 16  ;;  %v618_v55 = vrot.slane %v2708_v6, 1  ;;  %s3254_s15 = scalar_lea.vmem %s3308_s4, %s2551_s25 }
  0x13   : > { %v364_v16 = vshll.u32 %v2714_v10, 16  ;;  %v368_v17 = vshrl.u32 %v2714_v10, 16  ;;  %v372_v19 = vshll.u32 %v2717_v11, 16  ;;  %v2733_v21 = vld [vmem:[%s2698_s24 + $0x30] ss:$0 sps:$4 sm:$0x77]  }
  0x14   : > { %v333_v7 = vshrl.u32 %v2705_v5, 16  ;;  %v335_v8 = vshll.u32 %v2705_v5, 16  ;;  %v342_v15 = vrot.slane %v340_v9, 1  ;;  %v348_v24 = vshll.u32 %v2720_v12, 16  ;;  %v2743_v32 = vld [vmem:[%s2698_s24 + $0x18] sm:$0xff]  }
  0x15   : > { %v366_v23 = vrot.slane %v364_v16, 1  ;;  %v374_v25 = vrot.slane %v372_v19, 1  ;;  %v376_v29 = vshrl.u32 %v2717_v11, 16  ;;  %v380_v30 = vshll.u32 %v2733_v21, 16  ;;  %v610_v49 = vld [vmem:[%s2698_s24] sm:$0xe] }
  0x16   : > { %v337_v14 = vrot.slane %v335_v8, 1  ;;  %v346_v34 = vor.u32 %v344_v20, %v342_v15  ;;  %v350_v35 = vrot.slane %v348_v24, 1  ;;  %v352_v38 = vshrl.u32 %v2720_v12, 16  ;;  %v2586_v8 = vld [vmem:[%s2698_s24 + $0x30] ss:$0 sps:$4 sm:$0x33]  }
  0x17   : > { %v370_v28 = vor.u32 %v368_v17, %v366_v23  ;;  %v378_v36 = vor.u32 %v376_v29, %v374_v25  ;;  %v382_v37 = vrot.slane %v380_v30, 1  ;;  %v356_v39 = vshll.u32 %v2743_v32, 16  ;;  %v2125_v17 = vld [vmem:[%s3305_s1 + $0x14] sm:$0xf]  ;;  %v2134_v30 = vld [vmem:[%s3305_s1 + $0x18] sm:$0xf] }
  0x18   : > { %v338_v22 = vor.u32 %v337_v14, %v333_v7  ;;  %v351_v40 = vsel %vm331_vm2, %v346_v34, %v350_v35  ;;  %v354_v42 = vor.u32 %v352_v38, %v350_v35  ;;  %v384_v44 = vshrl.u32 %v2733_v21, 16 }
  0x19   : > { %v375_v33 = vsel %vm331_vm2, %v370_v28, %v374_v25  ;;  %v383_v41 = vsel %vm331_vm2, %v378_v36, %v382_v37  ;;  %v358_v43 = vrot.slane %v356_v39, 1  ;;  %v360_v46 = vshrl.u32 %v2743_v32, 16  ;;  %v2882_v36 = vld [vmem:[%s2698_s24 + $0x1c] sm:$0xff]  }
  0x1a   : > { %v343_v27 = vsel %vm331_vm2, %v338_v22, %v342_v15  ;;  %2297 = vmatmul.mubr.msk.bf16.vlgmr.msra.gmra.mrb[0].mxu1 %vm387_vm3, %v375_v33  ;;  %v386_v47 = vor.u32 %v384_v44, %v382_v37  ;;  %v2093_v51 = vcombine.low %v610_v49, %v2702_v4  ;;  %v620_v59 = vrot.slane %v2720_v12, 1 }
  0x1b   : > { %2281 = vmatmul.mubr.msk.bf16.vlgmr.msra.gmra.mrb[0].mxu0 %vm387_vm3, %v343_v27  ;;  %2309 = vmatpush3.bf16.msra.mxu1 %v520_v31  ;;  %v359_v45 = vsel %vm331_vm2, %v354_v42, %v358_v43  ;;  %v362_v48 = vor.u32 %v360_v46, %v358_v43  ;;  %v622_v61 = vrot.slane %v2743_v32, 1  ;;  %v624_v63 = vrot.slane %v2714_v10, 1 }
  0x1c   : > { %2339 = vmatpush3.bf16.msra.mxu0 %v652_v26  ;;  %2284 = vmatprep.mubr.msk.bf16.mxu0 %vm2636_vm1, %v2635_v1  ;;  %v617_v54 = vrot.slane %v2093_v51, 1  ;;  %v621_v60 = vsel %vm616_vm4, %v618_v55, %v620_v59  ;;  %v626_v2 = vrot.slane %v2717_v11, 1  ;;  %v628_v4 = vrot.slane %v2733_v21, 1 }
  0x1d   : > { %2398 = vmatprep.subr.bf16.mxu0 %v2635_v1  ;;  %2300 = vmatprep.mubr.msk.bf16.mxu1 %vm2636_vm1, %v2635_v1  ;;  %v367_v52 = vsel %vm331_vm2, %v362_v48, %v366_v23  ;;  %v623_v62 = vsel %vm616_vm4, %v620_v59, %v622_v61  ;;  %v625_v0 = vsel %vm616_vm4, %v622_v61, %v624_v63  ;;  %v2862_v23 = vld [vmem:[%s2698_s24 + $0x14] sm:$0xff]   ;;  %v1177_v24 = vsel %vm409_vm0, %v2125_v17, 0 }
  0x1e   : > { %2368 = vmatprep.subr.bf16.mxu1 %v2635_v1  ;;  %v619_v57 = vsel %vm616_vm4, %v617_v54, %v618_v55  ;;  %v627_v3 = vsel %vm616_vm4, %v624_v63, %v626_v2  ;;  %v629_v7 = vsel %vm616_vm4, %v626_v2, %v628_v4  ;;  %v966_v27 = vshrl.u32 %v2862_v23, 16  ;;  %v2911_v54 = vld [vmem:[%s2698_s24 + $0x2c] sm:$0xff]  }
  0x1f   : > { %v969_v28 = vshll.u32 %v2862_v23, 16  ;;  %v806_v29 = vrot.slane %v2862_v23, 1  ;;  %v1363_v34 = vsel %vm409_vm0, %v2134_v30, 0  ;;  %v975_v38 = vshrl.u32 %v2882_v36, 16 }
  0x20   : > { %v978_v39 = vshll.u32 %v2882_v36, 16  ;;  %v993_v56 = vshrl.u32 %v2911_v54, 16 }
  0x21   : > { %v971_v33 = vrot.slane %v969_v28, 2  ;;  %v977_v42 = vrot.slane %v975_v38, 1 }
  0x22   : > { %2301 = vmatmul.mubr.msk.bf16.gmra.mrb[4].mxu1 %vm387_vm3, %v383_v41  ;;  %v980_v43 = vrot.slane %v978_v39, 2 }
  0x23   : > { %2285 = vmatmul.mubr.msk.bf16.gmra.mrb[4].mxu0 %vm387_vm3, %v351_v40  ;;  %2304 = vmatprep.mubr.msk.bf16.mxu1 %vm2636_vm1, %v2635_v1  ;;  %v808_v40 = vrot.slane %v2882_v36, 1 }
  0x24   : > { %2288 = vmatprep.mubr.msk.bf16.mxu0 %vm2636_vm1, %v2635_v1  ;;  %v981_v46 = vor.u32 %v980_v43, %v977_v42  ;;  %v2601_v42 = vld [vmem:[%s2698_s24 + $0x30] sm:$0xff]  }
  0x25   : > { %v809_v44 = vsel %vm616_vm4, %v806_v29, %v808_v40 }
  0x2a   : > { %2305 = vmatmul.mubr.msk.bf16.gmra.mrb[8].mxu1 %vm387_vm3, %v386_v47 }
  0x2b   : > { %2289 = vmatmul.mubr.msk.bf16.gmra.mrb[8].mxu0 %vm387_vm3, %v359_v45  ;;  %2310 = vmatprep.mubr.msk.bf16.mxu1 %vm2636_vm1, %v2635_v1  ;;  %v2897_v45 = vld [vmem:[%s2698_s24 + $0x24] sm:$0xff]  }
  0x2c   : > { %2292 = vmatprep.mubr.msk.bf16.mxu0 %vm2636_vm1, %v2635_v1  ;;  %v984_v47 = vshrl.u32 %v2897_v45, 16  ;;  %v987_v48 = vshll.u32 %v2897_v45, 16  ;;  %v810_v49 = vrot.slane %v2897_v45, 1 }
  0x2e   : > { %v986_v51 = vrot.slane %v984_v47, 1  ;;  %v1467_v47 = vld [vmem:[%s2698_s24 + $0xc] sm:$0xf] }
  0x32   : > { %2311 = vmatmul.mubr.msk.bf16.vlgmr.msra.gmra.mrb[12].mxu1 %vm387_vm3, %v2705_v5  ;;  %v755_v5 = vld [vmem:[%s2698_s24 + $0x4] sm:$0xe] }
  0x33   : > { %2293 = vmatmul.mubr.msk.bf16.gmra.mrb[12].mxu0 %vm387_vm3, %v367_v52  ;;  %2369 = vmatpush3.bf16.msra.mxu1 %v838_v53  ;;  %v989_v52 = vrot.slane %v987_v48, 2  ;;  %v811_v53 = vsel %vm616_vm4, %v808_v40, %v810_v49  ;;  %v1151_v40 = vrot.slane %v2911_v54, 2 }
  0x34   : > { %2340 = vmatprep.mubr.msk.bf16.mxu0 %vm2636_vm1, %v2635_v1  ;;  %2314 = vmatprep.mubr.msk.bf16.mxu1 %vm2636_vm1, %v2635_v1 }
  0x35   : > { %2428 = vmatprep.subr.bf16.mxu1 %v2635_v1  ;;  %v990_v55 = vor.u32 %v989_v52, %v986_v51  ;;  %v2604_v52 = vld [vmem:[%s2698_s24 + $0x10] sm:$0xff]  }
  0x37   : > { %v991_v59 = vsel %vm947_vm5, %v981_v46, %v990_v55 }
  0x3a   : > { %2315 = vmatmul.mubr.msk.bf16.gmra.mrb[16].mxu1 %vm387_vm3, %v2708_v6  ;;  %v2840_v6 = vld [vmem:[%s2698_s24 + $0x8] sm:$0xf] }
  0x3b   : > { %2341 = vmatmul.mubr.msk.bf16.vlgmr.msra.gmra.mrb[16].mxu0 %vm387_vm3, %v619_v57  ;;  %2318 = vmatprep.mubr.msk.bf16.mxu1 %vm2636_vm1, %v2635_v1  ;;  %v2102_v9 = vcombine.low %v755_v5, %v2840_v6  ;;  %v996_v57 = vshll.u32 %v2911_v54, 16 }
  0x3c   : > { %2399 = vmatpush3.bf16.msra.mxu0 %v1032_v58  ;;  %2344 = vmatprep.mubr.msk.bf16.mxu0 %vm2636_vm1, %v2635_v1  ;;  %v812_v58 = vrot.slane %v2911_v54, 1 }
  0x3d   : > { %2458 = vmatprep.subr.bf16.mxu0 %v2635_v1  ;;  %v803_v15 = vrot.slane %v2102_v9, 1  ;;  %v998_v61 = vrot.slane %v996_v57, 2  ;;  %v1530_v57 = vshll.u32 %v2604_v52, 16 }
  0x3e   : > { %v813_v63 = vsel %vm616_vm4, %v810_v49, %v812_v58  ;;  %v2602_v49 = vld [vmem:[%s2698_s24 + $0x38] ss:$0 sps:$4 sm:$0xff]  }
  0x42   : > { %2319 = vmatmul.mubr.msk.bf16.gmra.mrb[20].mxu1 %vm387_vm3, %v2720_v12  ;;  %v952_v12 = vshll.u32 %v2102_v9, 16 }
  0x43   : > { %2345 = vmatmul.mubr.msk.bf16.gmra.mrb[20].mxu0 %vm387_vm3, %v621_v60  ;;  %2322 = vmatprep.mubr.msk.bf16.mxu1 %vm2636_vm1, %v2635_v1  ;;  %v995_v60 = vrot.slane %v993_v56, 1  ;;  %v1527_v56 = vshrl.u32 %v2604_v52, 16 }
  0x44   : > { %2348 = vmatprep.mubr.msk.bf16.mxu0 %vm2636_vm1, %v2635_v1  ;;  %v954_v19 = vrot.slane %v952_v12, 2 }
  0x45   : > { %v999_v2 = vor.u32 %v998_v61, %v995_v60  ;;  %v1529_v61 = vrot.slane %v1527_v56, 2 }
  0x4a   : > { %2323 = vmatmul.mubr.msk.bf16.gmra.mrb[24].mxu1 %vm387_vm3, %v2743_v32  ;;  %v968_v32 = vrot.slane %v966_v27, 1  ;;  %v2598_v27 = vld [vmem:[%s2698_s24 + $0x18] sm:$0xff]  }
  0x4b   : > { %2349 = vmatmul.mubr.msk.bf16.gmra.mrb[24].mxu0 %vm387_vm3, %v623_v62  ;;  %2326 = vmatprep.mubr.msk.bf16.mxu1 %vm2636_vm1, %v2635_v1  ;;  %v2924_v62 = vld [vmem:[%s2698_s24 + $0x34] ss:$0 sps:$4 sm:$0xff]   ;;  %v1331_v30 = vrot.slane %v2598_v27, 2 }
  0x4c   : > { %2352 = vmatprep.mubr.msk.bf16.mxu0 %vm2636_vm1, %v2635_v1  ;;  %v972_v37 = vor.u32 %v971_v33, %v968_v32  ;;  %v2599_v32 = vld [vmem:[%s2698_s24 + $0x20] sm:$0xff]  }
  0x4e   : > { %v982_v50 = vsel %vm947_vm5, %v972_v37, %v981_v46  ;;  %v1466_v46 = vld [vmem:[%s2698_s24 + $0x8] sm:$0xc] }
  0x4f   : > { %v2150_v51 = vcombine.low %v1466_v46, %v1467_v47 }
  0x51   : > { %v1519_v54 = vshrl.u32 %v2150_v51, 16 }
  0x52   : > { %2327 = vmatmul.mubr.msk.bf16.gmra.mrb[28].mxu1 %vm387_vm3, %v2714_v10  ;;  %v2846_v10 = vld [vmem:[%s2698_s24 + $0xc] sm:$0xff]  }
  0x53   : > { %2353 = vmatmul.mubr.msk.bf16.gmra.mrb[28].mxu0 %vm387_vm3, %v625_v0  ;;  %2330 = vmatprep.mubr.msk.bf16.mxu1 %vm2636_vm1, %v2635_v1  ;;  %v957_v13 = vshrl.u32 %v2846_v10, 16  ;;  %v960_v14 = vshll.u32 %v2846_v10, 16  ;;  %v804_v16 = vrot.slane %v2846_v10, 1  ;;  %v2593_v0 = vld [vmem:[%s2698_s24 + $0x34] ss:$0 sps:$4 sm:$0x77]  }
  0x54   : > { %2356 = vmatprep.mubr.msk.bf16.mxu0 %vm2636_vm1, %v2635_v1  ;;  %v814_v5 = vrot.slane %v2593_v0, 1  ;;  %v1143_v17 = vrot.slane %v2846_v10, 2  ;;  %v1145_v10 = vrot.slane %v2862_v23, 2  ;;  %v1147_v23 = vrot.slane %v2882_v36, 2  ;;  %v1705_v0 = vld [vmem:[%s2698_s24 + $0x8] sm:$0x8] }
  0x55   : > { %v959_v20 = vrot.slane %v957_v13, 1  ;;  %v962_v21 = vrot.slane %v960_v14, 2  ;;  %v805_v22 = vsel %vm616_vm4, %v803_v15, %v804_v16  ;;  %v807_v35 = vsel %vm616_vm4, %v804_v16, %v806_v29  ;;  %v1135_v13 = vld [vmem:[%s2698_s24 + $0x4] sm:$0xc] }
  0x56   : > { %v2126_v15 = vcombine.low %v1135_v13, %v2840_v6  ;;  %v2596_v6 = vld [vmem:[%s2698_s24 + $0x8] sm:$0xfc]   ;;  %v1146_v29 = vsel %vm1141_vm6, %v1143_v17, %v1145_v10  ;;  %v1148_v33 = vsel %vm1141_vm6, %v1145_v10, %v1147_v23 }
  0x57   : > { %v963_v26 = vor.u32 %v962_v21, %v959_v20 }
  0x58   : > { %v1142_v16 = vrot.slane %v2126_v15, 2 }
  0x59   : > { %v973_v41 = vsel %vm947_vm5, %v963_v26, %v972_v37  ;;  %v2600_v37 = vld [vmem:[%s2698_s24 + $0x28] sm:$0xff]  }
  0x5a   : > { %2331 = vmatmul.mubr.msk.bf16.gmra.mrb[32].mxu1 %vm387_vm3, %v2717_v11  ;;  %v949_v11 = vshrl.u32 %v2102_v9, 16  ;;  %v1144_v20 = vsel %vm1141_vm6, %v1142_v16, %v1143_v17  ;;  %v1335_v39 = vrot.slane %v2600_v37, 2 }
  0x5b   : > { %2357 = vmatmul.mubr.msk.bf16.gmra.mrb[32].mxu0 %vm387_vm3, %v627_v3  ;;  %2334 = vmatprep.mubr.msk.bf16.mxu1 %vm2636_vm1, %v2635_v1  ;;  %v1002_v3 = vshrl.u32 %v2924_v62, 16 }
  0x5c   : > { %2360 = vmatprep.mubr.msk.bf16.mxu0 %vm2636_vm1, %v2635_v1  ;;  %v951_v18 = vrot.slane %v949_v11, 1  ;;  %v815_v11 = vsel %vm616_vm4, %v812_v58, %v814_v5 }
  0x5e   : > { %v955_v25 = vor.u32 %v954_v19, %v951_v18  ;;  %v2149_v18 = vld [vmem:[%s3305_s1 + $0x1c] sm:$0xf]  ;;  %v2597_v19 = vld [vmem:[%s2698_s24 + $0x10] sm:$0xff]  }
  0x5f   : > { %v1602_v21 = vsel %vm409_vm0, %v2149_v18, 0 }
  0x60   : > { %v964_v31 = vsel %vm947_vm5, %v955_v25, %v963_v26  ;;  %v2164_v25 = vld [vmem:[%s3305_s1 + $0x20] sm:$0xf] }
  0x61   : > { %v1747_v28 = vsel %vm409_vm0, %v2164_v25, 0 }
  0x62   : > { %2335 = vmatmul.mubr.msk.bf16.gmra.mrb[36].mxu1 %vm387_vm3, %v2586_v8  ;;  %v1004_v8 = vrot.slane %v1002_v3, 1 }
  0x63   : > { %2361 = vmatmul.mubr.msk.bf16.gmra.mrb[36].mxu0 %vm387_vm3, %v629_v7  ;;  %2370 = vmatprep.mubr.msk.bf16.mxu1 %vm2636_vm1, %v2635_v1  ;;  %v1000_v7 = vsel %vm947_vm5, %v990_v55, %v999_v2  ;;  %v1522_v55 = vshll.u32 %v2150_v51, 16 }
  0x64   : > { %2364 = vmatprep.mubr.msk.bf16.mxu0 %vm2636_vm1, %v2635_v1 }
  0x65   : > { %v1524_v60 = vrot.slane %v1522_v55, 3 }
  0x6a   : > { %2371 = vmatmul.mubr.msk.bf16.vlgmr.msra.gmra.mrb[40].mxu1 %vm387_vm3, %v805_v22  ;;  %v1328_v22 = vrot.slane %v2596_v6, 2 }
  0x6b   : > { %2365 = vmatmul.mubr.msk.bf16.gmra.mrb[40].mxu0 %vm387_vm3, %v628_v4  ;;  %2429 = vmatpush3.bf16.msra.mxu1 %v1177_v24  ;;  %v1005_v4 = vshll.u32 %v2924_v62, 16  ;;  %v1329_v24 = vrot.slane %v2597_v19, 2 }
  0x6c   : > { %2400 = vmatprep.mubr.msk.bf16.mxu0 %vm2636_vm1, %v2635_v1  ;;  %2374 = vmatprep.mubr.msk.bf16.mxu1 %vm2636_vm1, %v2635_v1 }
  0x6d   : > { %2488 = vmatprep.subr.bf16.mxu1 %v2635_v1  ;;  %v1007_v9 = vrot.slane %v1005_v4, 2  ;;  %v1330_v26 = vsel %vm1141_vm6, %v1328_v22, %v1329_v24 }
  0x6f   : > { %v1008_v12 = vor.u32 %v1007_v9, %v1004_v8 }
  0x71   : > { %v1009_v14 = vsel %vm947_vm5, %v999_v2, %v1008_v12 }
  0x72   : > { %2375 = vmatmul.mubr.msk.bf16.gmra.mrb[44].mxu1 %vm387_vm3, %v807_v35  ;;  %v1149_v35 = vrot.slane %v2897_v45, 2  ;;  %v1153_v45 = vrot.slane %v2924_v62, 2  ;;  %v1532_v62 = vrot.slane %v1530_v57, 3 }
  0x73   : > { %2401 = vmatmul.mubr.msk.bf16.vlgmr.msra.gmra.mrb[44].mxu0 %vm387_vm3, %v964_v31  ;;  %2378 = vmatprep.mubr.msk.bf16.mxu1 %vm2636_vm1, %v2635_v1  ;;  %v1332_v31 = vsel %vm1141_vm6, %v1329_v24, %v1331_v30 }
  0x74   : > { %2459 = vmatpush3.bf16.msra.mxu0 %v1363_v34  ;;  %2404 = vmatprep.mubr.msk.bf16.mxu0 %vm2636_vm1, %v2635_v1  ;;  %v1333_v34 = vrot.slane %v2599_v32, 2  ;;  %v1150_v38 = vsel %vm1141_vm6, %v1147_v23, %v1149_v35  ;;  %v1152_v43 = vsel %vm1141_vm6, %v1149_v35, %v1151_v40  ;;  %v1533_v3 = vor.u32 %v1532_v62, %v1529_v61 }
  0x75   : > { %2518 = vmatprep.subr.bf16.mxu0 %v2635_v1 }
  0x76   : > { %v1334_v36 = vsel %vm1141_vm6, %v1331_v30, %v1333_v34  ;;  %v3061_v30 = vld [vmem:[%s2698_s24 + $0x30] sm:$0xff]  }
  0x7a   : > { %2379 = vmatmul.mubr.msk.bf16.gmra.mrb[48].mxu1 %vm387_vm3, %v809_v44  ;;  %v1337_v44 = vrot.slane %v2601_v42, 2 }
  0x7b   : > { %2405 = vmatmul.mubr.msk.bf16.gmra.mrb[48].mxu0 %vm387_vm3, %v973_v41  ;;  %2382 = vmatprep.mubr.msk.bf16.mxu1 %vm2636_vm1, %v2635_v1  ;;  %v1336_v41 = vsel %vm1141_vm6, %v1333_v34, %v1335_v39  ;;  %v1566_v34 = vshll.u32 %v3061_v30, 16 }
  0x7c   : > { %2408 = vmatprep.mubr.msk.bf16.mxu0 %vm2636_vm1, %v2635_v1  ;;  %v1338_v48 = vsel %vm1141_vm6, %v1335_v39, %v1337_v44 }
  0x82   : > { %2383 = vmatmul.mubr.msk.bf16.gmra.mrb[52].mxu1 %vm387_vm3, %v811_v53  ;;  %v1339_v53 = vrot.slane %v2602_v49, 2 }
  0x83   : > { %2409 = vmatmul.mubr.msk.bf16.gmra.mrb[52].mxu0 %vm387_vm3, %v982_v50  ;;  %2386 = vmatprep.mubr.msk.bf16.mxu1 %vm2636_vm1, %v2635_v1  ;;  %v1154_v50 = vsel %vm1141_vm6, %v1151_v40, %v1153_v45 }
  0x84   : > { %2412 = vmatprep.mubr.msk.bf16.mxu0 %vm2636_vm1, %v2635_v1  ;;  %v1340_v58 = vsel %vm1141_vm6, %v1337_v44, %v1339_v53  ;;  %v1568_v44 = vrot.slane %v1566_v34, 3 }
  0x8a   : > { %2387 = vmatmul.mubr.msk.bf16.gmra.mrb[56].mxu1 %vm387_vm3, %v813_v63  ;;  %v2605_v63 = vld [vmem:[%s2698_s24 + $0x18] sm:$0xff]  }
  0x8b   : > { %2413 = vmatmul.mubr.msk.bf16.gmra.mrb[56].mxu0 %vm387_vm3, %v991_v59  ;;  %2390 = vmatprep.mubr.msk.bf16.mxu1 %vm2636_vm1, %v2635_v1  ;;  %v1521_v59 = vrot.slane %v1519_v54, 2  ;;  %v1536_v4 = vshrl.u32 %v2605_v63, 16  ;;  %v1715_v22 = vrot.slane %v2605_v63, 3 }
  0x8c   : > { %2416 = vmatprep.mubr.msk.bf16.mxu0 %vm2636_vm1, %v2635_v1 }
  0x8d   : > { %v1525_v2 = vor.u32 %v1524_v60, %v1521_v59  ;;  %v1538_v9 = vrot.slane %v1536_v4, 2 }
  0x8f   : > { %v1534_v8 = vsel %vm1517_vm7, %v1525_v2, %v1533_v3 }
  0x92   : > { %2391 = vmatmul.mubr.msk.bf16.gmra.mrb[60].mxu1 %vm387_vm3, %v815_v11 }
  0x93   : > { %2417 = vmatmul.mubr.msk.bf16.gmra.mrb[60].mxu0 %vm387_vm3, %v1000_v7  ;;  %2394 = vmatprep.mubr.msk.bf16.mxu1 %vm2636_vm1, %v2635_v1  ;;  %v2165_v7 = vcombine.low %v1705_v0, %v1467_v47 }
  0x94   : > { %2420 = vmatprep.mubr.msk.bf16.mxu0 %vm2636_vm1, %v2635_v1 }
  0x95   : > { %v1712_v13 = vrot.slane %v2165_v7, 3 }
  0x9a   : > { %2395 = vmatmul.mubr.msk.bf16.gmra.mrb[64].mxu1 %vm387_vm3, %v814_v5  ;;  %v1539_v5 = vshll.u32 %v2605_v63, 16  ;;  %v1721_v63 = vrot.slane %v3061_v30, 3 }
  0x9b   : > { %2421 = vmatmul.mubr.msk.bf16.gmra.mrb[64].mxu0 %vm387_vm3, %v1009_v14  ;;  %2430 = vmatprep.mubr.msk.bf16.mxu1 %vm2636_vm1, %v2635_v1  ;;  %v1713_v14 = vrot.slane %v2604_v52, 3 }
  0x9c   : > { %2424 = vmatprep.mubr.msk.bf16.mxu0 %vm2636_vm1, %v2635_v1  ;;  %v1541_v11 = vrot.slane %v1539_v5, 3 }
  0x9d   : > { %v1714_v18 = vsel %vm1711_vm8, %v1712_v13, %v1713_v14 }
  0x9e   : > { %v1542_v15 = vor.u32 %v1541_v11, %v1538_v9 }
  0xa0   : > { %v1543_v6 = vsel %vm1517_vm7, %v1533_v3, %v1542_v15 }
  0xa2   : > { %2431 = vmatmul.mubr.msk.bf16.vlgmr.msra.gmra.mrb[68].mxu1 %vm387_vm3, %v1144_v20 }
  0xa3   : > { %2425 = vmatmul.mubr.msk.bf16.gmra.mrb[68].mxu0 %vm387_vm3, %v1008_v12  ;;  %2489 = vmatpush3.bf16.msra.mxu1 %v1602_v21  ;;  %v3035_v12 = vld [vmem:[%s2698_s24 + $0x20] sm:$0xff]   ;;  %v3048_v21 = vld [vmem:[%s2698_s24 + $0x28] sm:$0xff]  }
  0xa4   : > { %2460 = vmatprep.mubr.msk.bf16.mxu0 %vm2636_vm1, %v2635_v1  ;;  %2434 = vmatprep.mubr.msk.bf16.mxu1 %vm2636_vm1, %v2635_v1  ;;  %v1545_v16 = vshrl.u32 %v3035_v12, 16  ;;  %v1548_v17 = vshll.u32 %v3035_v12, 16  ;;  %v1554_v10 = vshrl.u32 %v3048_v21, 16  ;;  %v1557_v25 = vshll.u32 %v3048_v21, 16 }
  0xa5   : > { %v1717_v23 = vrot.slane %v3035_v12, 3  ;;  %v1719_v47 = vrot.slane %v3048_v21, 3 }
  0xa6   : > { %v1547_v19 = vrot.slane %v1545_v16, 2  ;;  %v1550_v20 = vrot.slane %v1548_v17, 3 }
  0xa7   : > { %v1720_v55 = vsel %vm1711_vm8, %v1717_v23, %v1719_v47  ;;  %v1722_v7 = vsel %vm1711_vm8, %v1719_v47, %v1721_v63 }
  0xa8   : > { %v1551_v24 = vor.u32 %v1550_v20, %v1547_v19 }
  0xaa   : > { %2435 = vmatmul.mubr.msk.bf16.gmra.mrb[72].mxu1 %vm387_vm3, %v1146_v29  ;;  %v1552_v27 = vsel %vm1517_vm7, %v1542_v15, %v1551_v24  ;;  %v1559_v29 = vrot.slane %v1557_v25, 3 }
  0xab   : > { %2461 = vmatmul.mubr.msk.bf16.vlgmr.msra.gmra.mrb[72].mxu0 %vm387_vm3, %v1330_v26  ;;  %2438 = vmatprep.mubr.msk.bf16.mxu1 %vm2636_vm1, %v2635_v1  ;;  %v1716_v26 = vsel %vm1711_vm8, %v1713_v14, %v1715_v22 }
  0xac   : > { %2519 = vmatpush3.bf16.msra.mxu0 %v1747_v28  ;;  %2464 = vmatprep.mubr.msk.bf16.mxu0 %vm2636_vm1, %v2635_v1  ;;  %v1556_v28 = vrot.slane %v1554_v10, 2 }
  0xae   : > { %v1560_v32 = vor.u32 %v1559_v29, %v1556_v28 }
  0xb0   : > { %v1561_v42 = vsel %vm1517_vm7, %v1551_v24, %v1560_v32 }
  0xb2   : > { %2439 = vmatmul.mubr.msk.bf16.gmra.mrb[76].mxu1 %vm387_vm3, %v1148_v33  ;;  %v1563_v33 = vshrl.u32 %v3061_v30, 16 }
  0xb3   : > { %2465 = vmatmul.mubr.msk.bf16.gmra.mrb[76].mxu0 %vm387_vm3, %v1332_v31  ;;  %2442 = vmatprep.mubr.msk.bf16.mxu1 %vm2636_vm1, %v2635_v1 }
  0xb4   : > { %2468 = vmatprep.mubr.msk.bf16.mxu0 %vm2636_vm1, %v2635_v1 }
  0xba   : > { %2443 = vmatmul.mubr.msk.bf16.gmra.mrb[80].mxu1 %vm387_vm3, %v1150_v38  ;;  %v1718_v38 = vsel %vm1711_vm8, %v1715_v22, %v1717_v23 }
  0xbb   : > { %2469 = vmatmul.mubr.msk.bf16.gmra.mrb[80].mxu0 %vm387_vm3, %v1334_v36  ;;  %2446 = vmatprep.mubr.msk.bf16.mxu1 %vm2636_vm1, %v2635_v1 }
  0xbc   : > { %2472 = vmatprep.mubr.msk.bf16.mxu0 %vm2636_vm1, %v2635_v1 }
  0xc2   : > { %2447 = vmatmul.mubr.msk.bf16.gmra.mrb[84].mxu1 %vm387_vm3, %v1152_v43  ;;  %v1565_v43 = vrot.slane %v1563_v33, 2 }
  0xc3   : > { %2473 = vmatmul.mubr.msk.bf16.gmra.mrb[84].mxu0 %vm387_vm3, %v1336_v41  ;;  %2450 = vmatprep.mubr.msk.bf16.mxu1 %vm2636_vm1, %v2635_v1 }
  0xc4   : > { %2476 = vmatprep.mubr.msk.bf16.mxu0 %vm2636_vm1, %v2635_v1  ;;  %v1569_v49 = vor.u32 %v1568_v44, %v1565_v43 }
  0xc6   : > { %v1570_v59 = vsel %vm1517_vm7, %v1560_v32, %v1569_v49 }
  0xca   : > { %2451 = vmatmul.mubr.msk.bf16.gmra.mrb[88].mxu1 %vm387_vm3, %v1154_v50 }
  0xcb   : > { %2477 = vmatmul.mubr.msk.bf16.gmra.mrb[88].mxu0 %vm387_vm3, %v1338_v48  ;;  %2454 = vmatprep.mubr.msk.bf16.mxu1 %vm2636_vm1, %v2635_v1 }
  0xcc   : > { %2480 = vmatprep.mubr.msk.bf16.mxu0 %vm2636_vm1, %v2635_v1 }
  0xd2   : > { %2455 = vmatmul.mubr.msk.bf16.gmra.mrb[92].mxu1 %vm387_vm3, %v1153_v45  ;;  %v3081_v45 = vld [vmem:[%s2698_s24 + $0x38] sm:$0x1f]  }
  0xd3   : > { %2481 = vmatmul.mubr.msk.bf16.gmra.mrb[92].mxu0 %vm387_vm3, %v1340_v58  ;;  %2490 = vmatprep.mubr.msk.bf16.mxu1 %vm2636_vm1, %v2635_v1  ;;  %v1572_v50 = vshrl.u32 %v3081_v45, 16  ;;  %v1575_v51 = vshll.u32 %v3081_v45, 16  ;;  %v1723_v14 = vrot.slane %v3081_v45, 3 }
  0xd4   : > { %2484 = vmatprep.mubr.msk.bf16.mxu0 %vm2636_vm1, %v2635_v1 }
  0xd5   : > { %v1574_v60 = vrot.slane %v1572_v50, 2  ;;  %v1577_v61 = vrot.slane %v1575_v51, 3 }
  0xd7   : > { %v1578_v2 = vor.u32 %v1577_v61, %v1574_v60 }
  0xd9   : > { %v1579_v12 = vsel %vm1517_vm7, %v1569_v49, %v1578_v2 }
  0xda   : > { %2491 = vmatmul.mubr.msk.bf16.vlgmr.msra.gmra.mrb[96].mxu1 %vm387_vm3, %v1534_v8 }
  0xdb   : > { %2485 = vmatmul.mubr.msk.bf16.gmra.mrb[96].mxu0 %vm387_vm3, %v1339_v53  ;;  %2494 = vmatprep.mubr.msk.bf16.mxu1 %vm2636_vm1, %v2635_v1 }
  0xdc   : > { %2520 = vmatprep.mubr.msk.bf16.mxu0 %vm2636_vm1, %v2635_v1 }
  0xe2   : > { %2495 = vmatmul.mubr.msk.bf16.gmra.mrb[100].mxu1 %vm387_vm3, %v1543_v6  ;;  %v1724_v6 = vsel %vm1711_vm8, %v1721_v63, %v1723_v14 }
  0xe3   : > { %2521 = vmatmul.mubr.msk.bf16.vlgmr.msra.gmra.mrb[100].mxu0 %vm387_vm3, %v1714_v18  ;;  %2498 = vmatprep.mubr.msk.bf16.mxu1 %vm2636_vm1, %v2635_v1 }
  0xe4   : > { %2524 = vmatprep.mubr.msk.bf16.mxu0 %vm2636_vm1, %v2635_v1 }
  0xea   : > { %2499 = vmatmul.mubr.msk.bf16.gmra.mrb[104].mxu1 %vm387_vm3, %v1552_v27 }
  0xeb   : > { %2525 = vmatmul.mubr.msk.bf16.gmra.mrb[104].mxu0 %vm387_vm3, %v1716_v26  ;;  %2502 = vmatprep.mubr.msk.bf16.mxu1 %vm2636_vm1, %v2635_v1 }
  0xec   : > { %2528 = vmatprep.mubr.msk.bf16.mxu0 %vm2636_vm1, %v2635_v1 }
  0xed   : > { %v3074_v37 = vpop.f32.mrb[0].mxu1 }
  0xee   : > { %v3068_v31 = vpop.f32.mrb[0].mxu0  ;;  %v2298_v40 = vpop.f32.mrb[1].mxu1 }
  0xef   : > { %v2282_v35 = vpop.f32.mrb[1].mxu0  ;;  %v3077_v41 = vpop.f32.mrb[2].mxu1 }
  0xf0   : > { %v450_v36 = vpop.f32.mrb[2].mxu0  ;;  %v2299_v46 = vpop.f32.mrb[3].mxu1 }
  0xf1   : > { %v2283_v39 = vpop.f32.mrb[3].mxu0 }
  0xf2   : > { %2503 = vmatmul.mubr.msk.bf16.gmra.mrb[108].mxu1 %vm387_vm3, %v1561_v42 }
  0xf3   : > { %2529 = vmatmul.mubr.msk.bf16.gmra.mrb[108].mxu0 %vm387_vm3, %v1718_v38  ;;  %2506 = vmatprep.mubr.msk.bf16.mxu1 %vm2636_vm1, %v2635_v1 }
  0xf4   : > { %2532 = vmatprep.mubr.msk.bf16.mxu0 %vm2636_vm1, %v2635_v1 }
  0xf5   : > { %v3092_v54 = vpop.f32.mrb[4].mxu1 }
  0xf6   : > { %v455_v48 = vpop.f32.mrb[4].mxu0  ;;  %v2302_v57 = vpop.f32.mrb[5].mxu1 }
  0xf7   : > { %v2286_v52 = vpop.f32.mrb[5].mxu0  ;;  %v3095_v58 = vpop.f32.mrb[6].mxu1 }
  0xf8   : > { %v458_v53 = vpop.f32.mrb[6].mxu0  ;;  %v2303_v62 = vpop.f32.mrb[7].mxu1 }
  0xf9   : > { %v2287_v56 = vpop.f32.mrb[7].mxu0 }
  0xfa   : > { %2507 = vmatmul.mubr.msk.bf16.gmra.mrb[112].mxu1 %vm387_vm3, %v1570_v59 }
  0xfb   : > { %2533 = vmatmul.mubr.msk.bf16.gmra.mrb[112].mxu0 %vm387_vm3, %v1720_v55  ;;  %2510 = vmatprep.mubr.msk.bf16.mxu1 %vm2636_vm1, %v2635_v1 }
  0xfc   : > { %2536 = vmatprep.mubr.msk.bf16.mxu0 %vm2636_vm1, %v2635_v1 }
  0xfd   : > { %v3105_v5 = vpop.f32.mrb[8].mxu1 }
  0xfe   : > { %v463_v0 = vpop.f32.mrb[8].mxu0  ;;  %v2306_v9 = vpop.f32.mrb[9].mxu1 }
  0xff   : > { %v2290_v3 = vpop.f32.mrb[9].mxu0  ;;  %v498_v11 = vpop.f32.mrb[10].mxu1 }
 0x100   : > { %v466_v4 = vpop.f32.mrb[10].mxu0  ;;  %v2307_v13 = vpop.f32.mrb[11].mxu1 }
 0x101   : > { %v2291_v8 = vpop.f32.mrb[11].mxu0 }
 0x102   : > { %2511 = vmatmul.mubr.msk.bf16.gmra.mrb[116].mxu1 %vm387_vm3, %v1579_v12 }
 0x103   : > { %2537 = vmatmul.mubr.msk.bf16.gmra.mrb[116].mxu0 %vm387_vm3, %v1722_v7  ;;  %2514 = vmatprep.mubr.msk.bf16.mxu1 %vm2636_vm1, %v2635_v1 }
 0x104   : > { %2540 = vmatprep.mubr.msk.bf16.mxu0 %vm2636_vm1, %v2635_v1 }
 0x105   : > { %v556_v17 = vpop.f32.mrb[12].mxu1 }
 0x106   : > { %v471_v15 = vpop.f32.mrb[12].mxu0  ;;  %v557_v19 = vadd.f32 %v556_v17, %v3068_v31  ;;  %v2312_v20 = vpop.f32.mrb[13].mxu1 }
 0x107   : > { %v2294_v16 = vpop.f32.mrb[13].mxu0  ;;  %v559_v22 = vpop.f32.mrb[14].mxu1 }
 0x108   : > { %v474_v18 = vpop.f32.mrb[14].mxu0  ;;  %v560_v24 = vadd.f32 %v559_v22, %v450_v36  ;;  %v2313_v10 = vpop.f32.mrb[15].mxu1 }
 0x109   : > { %v2295_v21 = vpop.f32.mrb[15].mxu0 }
 0x10a   : > { %2515 = vmatmul.mubr.msk.bf16.gmra.mrb[120].mxu1 %vm387_vm3, %v1578_v2 }
 0x10b   : > { %2541 = vmatmul.mubr.msk.bf16.gmra.mrb[120].mxu0 %vm387_vm3, %v1724_v6 }
 0x10c   : > { %2544 = vmatprep.mubr.msk.bf16.mxu0 %vm2636_vm1, %v2635_v1 }
 0x10d   : > { %v564_v28 = vpop.f32.mrb[16].mxu1 }
 0x10e   : > { %v688_v25 = vpop.f32.mrb[16].mxu0  ;;  %v565_v30 = vadd.f32 %v564_v28, %v455_v48  ;;  %v2316_v23 = vpop.f32.mrb[17].mxu1 }
 0x10f   : > { %v3122_v26 = vadd.f32 %v688_v25, %v557_v19  ;;  %v2342_v27 = vpop.f32.mrb[17].mxu0  ;;  %v567_v33 = vpop.f32.mrb[18].mxu1 }
 0x110   : > { %v691_v29 = vpop.f32.mrb[18].mxu0  ;;  %v568_v34 = vadd.f32 %v567_v33, %v458_v53  ;;  %v2317_v35 = vpop.f32.mrb[19].mxu1 }
 0x111   : > { %v3124_v31 = vadd.f32 %v691_v29, %v560_v24  ;;  %v2343_v32 = vpop.f32.mrb[19].mxu0 }
 0x113   : > { %2545 = vmatmul.mubr.msk.bf16.gmra.mrb[124].mxu0 %vm387_vm3, %v1723_v14 }
 0x115   : > { %v572_v39 = vpop.f32.mrb[20].mxu1 }
 0x116   : > { %v696_v36 = vpop.f32.mrb[20].mxu0  ;;  %v573_v42 = vadd.f32 %v572_v39, %v463_v0  ;;  %v2320_v43 = vpop.f32.mrb[21].mxu1 }
 0x117   : > { %v3127_v1 = vadd.f32 %v696_v36, %v565_v30  ;;  %v2346_v38 = vpop.f32.mrb[21].mxu0  ;;  %v575_v46 = vpop.f32.mrb[22].mxu1 }
 0x118   : > { %v699_v40 = vpop.f32.mrb[22].mxu0  ;;  %v576_v47 = vadd.f32 %v575_v46, %v466_v4  ;;  %v2321_v48 = vpop.f32.mrb[23].mxu1 }
 0x119   : > { %v3129_v44 = vadd.f32 %v699_v40, %v568_v34  ;;  %v2347_v45 = vpop.f32.mrb[23].mxu0 }
 0x11d   : > { %v580_v52 = vpop.f32.mrb[24].mxu1 }
 0x11e   : > { %v704_v49 = vpop.f32.mrb[24].mxu0  ;;  %v581_v55 = vadd.f32 %v580_v52, %v471_v15  ;;  %v2324_v56 = vpop.f32.mrb[25].mxu1 }
 0x11f   : > { %v3131_v50 = vadd.f32 %v704_v49, %v573_v42  ;;  %v2350_v51 = vpop.f32.mrb[25].mxu0  ;;  %v583_v60 = vpop.f32.mrb[26].mxu1 }
 0x120   : > { %v707_v53 = vpop.f32.mrb[26].mxu0  ;;  %v584_v61 = vadd.f32 %v583_v60, %v474_v18  ;;  %v2325_v62 = vpop.f32.mrb[27].mxu1 }
 0x121   : > { %v3133_v57 = vadd.f32 %v707_v53, %v576_v47  ;;  %v2351_v59 = vpop.f32.mrb[27].mxu0 }
 0x125   : > { %v588_v3 = vpop.f32.mrb[28].mxu1 }
 0x126   : > { %v712_v63 = vpop.f32.mrb[28].mxu0  ;;  %v589_v7 = vadd.f32 %v588_v3, %v3074_v37  ;;  %v2328_v8 = vpop.f32.mrb[29].mxu1 }
 0x127   : > { %v3135_v0 = vadd.f32 %v712_v63, %v581_v55  ;;  %v2354_v2 = vpop.f32.mrb[29].mxu0  ;;  %v591_v12 = vpop.f32.mrb[30].mxu1 }
 0x128   : > { %v715_v4 = vpop.f32.mrb[30].mxu0  ;;  %v592_v13 = vadd.f32 %v591_v12, %v3077_v41  ;;  %v2329_v14 = vpop.f32.mrb[31].mxu1 }
 0x129   : > { %v3138_v9 = vadd.f32 %v715_v4, %v584_v61  ;;  %v2355_v11 = vpop.f32.mrb[31].mxu0 }
 0x12d   : > { %v596_v18 = vpop.f32.mrb[32].mxu1 }
 0x12e   : > { %v720_v15 = vpop.f32.mrb[32].mxu0  ;;  %v597_v19 = vadd.f32 %v596_v18, %v3092_v54  ;;  %v2332_v20 = vpop.f32.mrb[33].mxu1 }
 0x12f   : > { %v3141_v16 = vadd.f32 %v720_v15, %v589_v7  ;;  %v2358_v17 = vpop.f32.mrb[33].mxu0  ;;  %v599_v22 = vpop.f32.mrb[34].mxu1 }
 0x130   : > { %v723_v6 = vpop.f32.mrb[34].mxu0  ;;  %v600_v24 = vadd.f32 %v599_v22, %v3095_v58  ;;  %v2333_v10 = vpop.f32.mrb[35].mxu1 }
 0x131   : > { %v3144_v21 = vadd.f32 %v723_v6, %v592_v13  ;;  %v2359_v37 = vpop.f32.mrb[35].mxu0 }
 0x135   : > { %v604_v28 = vpop.f32.mrb[36].mxu1 }
 0x136   : > { %v728_v25 = vpop.f32.mrb[36].mxu0  ;;  %v605_v30 = vadd.f32 %v604_v28, %v3105_v5  ;;  %v2336_v54 = vpop.f32.mrb[37].mxu1 }
 0x137   : > { %v3147_v27 = vadd.f32 %v728_v25, %v597_v19  ;;  %v2362_v41 = vpop.f32.mrb[37].mxu0  ;;  %v607_v33 = vpop.f32.mrb[38].mxu1 }
 0x138   : > { %v731_v29 = vpop.f32.mrb[38].mxu0  ;;  %v2337_v34 = vpop.f32.mrb[39].mxu1 }
 0x139   : > { %v3150_v23 = vadd.f32 %v731_v29, %v600_v24  ;;  %v2363_v32 = vpop.f32.mrb[39].mxu0 }
 0x13d   : > { %v874_v58 = vpop.f32.mrb[40].mxu1 }
 0x13e   : > { %v736_v35 = vpop.f32.mrb[40].mxu0  ;;  %v928_v40 = vadd.f32 %v874_v58, %v3122_v26  ;;  %v2372_v42 = vpop.f32.mrb[41].mxu1 }
 0x13f   : > { %v3152_v36 = vadd.f32 %v736_v35, %v605_v30  ;;  %v2366_v38 = vpop.f32.mrb[41].mxu0  ;;  %v877_v45 = vpop.f32.mrb[42].mxu1 }
 0x140   : > { %v739_v39 = vpop.f32.mrb[42].mxu0  ;;  %v929_v46 = vadd.f32 %v877_v45, %v3124_v31  ;;  %v2373_v5 = vpop.f32.mrb[43].mxu1 }
 0x141   : > { %v2367_v43 = vpop.f32.mrb[43].mxu0 }
 0x145   : > { %v882_v51 = vpop.f32.mrb[44].mxu1 }
 0x146   : > { %v1068_v47 = vpop.f32.mrb[44].mxu0  ;;  %v930_v53 = vadd.f32 %v882_v51, %v3127_v1  ;;  %v2376_v55 = vpop.f32.mrb[45].mxu1 }
 0x147   : > { %v3156_v48 = vadd.f32 %v1068_v47, %v928_v40  ;;  %v2402_v49 = vpop.f32.mrb[45].mxu0  ;;  %v885_v60 = vpop.f32.mrb[46].mxu1 }
 0x148   : > { %v1071_v52 = vpop.f32.mrb[46].mxu0  ;;  %v931_v26 = vadd.f32 %v885_v60, %v3129_v44  ;;  %v2377_v61 = vpop.f32.mrb[47].mxu1 }
 0x149   : > { %v3159_v56 = vadd.f32 %v1071_v52, %v929_v46  ;;  %v2403_v59 = vpop.f32.mrb[47].mxu0 }
 0x14d   : > { %v890_v2 = vpop.f32.mrb[48].mxu1 }
 0x14e   : > { %v1076_v62 = vpop.f32.mrb[48].mxu0  ;;  %v932_v4 = vadd.f32 %v890_v2, %v3131_v50  ;;  %v2380_v7 = vpop.f32.mrb[49].mxu1 }
 0x14f   : > { %v3162_v63 = vadd.f32 %v1076_v62, %v930_v53  ;;  %v2406_v31 = vpop.f32.mrb[49].mxu0  ;;  %v893_v11 = vpop.f32.mrb[50].mxu1 }
 0x150   : > { %v1079_v3 = vpop.f32.mrb[50].mxu0  ;;  %v933_v12 = vadd.f32 %v893_v11, %v3133_v57  ;;  %v2381_v13 = vpop.f32.mrb[51].mxu1 }
 0x151   : > { %v3165_v8 = vadd.f32 %v1079_v3, %v931_v26  ;;  %v2407_v1 = vpop.f32.mrb[51].mxu0 }
 0x155   : > { %v898_v17 = vpop.f32.mrb[52].mxu1 }
 0x156   : > { %v1084_v14 = vpop.f32.mrb[52].mxu0  ;;  %v934_v6 = vadd.f32 %v898_v17, %v3135_v0  ;;  %v2384_v19 = vpop.f32.mrb[53].mxu1 }
 0x157   : > { %v3168_v15 = vadd.f32 %v1084_v14, %v932_v4  ;;  %v2410_v44 = vpop.f32.mrb[53].mxu0  ;;  %v901_v37 = vpop.f32.mrb[54].mxu1 }
 0x158   : > { %v1087_v18 = vpop.f32.mrb[54].mxu0  ;;  %v935_v22 = vadd.f32 %v901_v37, %v3138_v9  ;;  %v2385_v24 = vpop.f32.mrb[55].mxu1 }
 0x159   : > { %v3171_v20 = vadd.f32 %v1087_v18, %v933_v12  ;;  %v2411_v50 = vpop.f32.mrb[55].mxu0 }
 0x15d   : > { %v906_v41 = vpop.f32.mrb[56].mxu1 }
 0x15e   : > { %v1092_v10 = vpop.f32.mrb[56].mxu0  ;;  %v936_v29 = vadd.f32 %v906_v41, %v3141_v16  ;;  %v2388_v30 = vpop.f32.mrb[57].mxu1 }
 0x15f   : > { %v3174_v25 = vadd.f32 %v1092_v10, %v934_v6  ;;  %v2414_v57 = vpop.f32.mrb[57].mxu0  ;;  %v909_v54 = vpop.f32.mrb[58].mxu1 }
 0x160   : > { %v1095_v28 = vpop.f32.mrb[58].mxu0  ;;  %v937_v33 = vadd.f32 %v909_v54, %v3144_v21  ;;  %v2389_v34 = vpop.f32.mrb[59].mxu1 }
 0x161   : > { %v3177_v32 = vadd.f32 %v1095_v28, %v935_v22  ;;  %v2415_v0 = vpop.f32.mrb[59].mxu0 }
 0x165   : > { %v914_v58 = vpop.f32.mrb[60].mxu1 }
 0x166   : > { %v1100_v35 = vpop.f32.mrb[60].mxu0  ;;  %v938_v40 = vadd.f32 %v914_v58, %v3147_v27  ;;  %v2392_v42 = vpop.f32.mrb[61].mxu1 }
 0x167   : > { %v3180_v38 = vadd.f32 %v1100_v35, %v936_v29  ;;  %v2418_v9 = vpop.f32.mrb[61].mxu0  ;;  %v917_v45 = vpop.f32.mrb[62].mxu1 }
 0x168   : > { %v1103_v39 = vpop.f32.mrb[62].mxu0  ;;  %v939_v46 = vadd.f32 %v917_v45, %v3150_v23  ;;  %v2393_v5 = vpop.f32.mrb[63].mxu1 }
 0x169   : > { %v3183_v43 = vadd.f32 %v1103_v39, %v937_v33  ;;  %v2419_v16 = vpop.f32.mrb[63].mxu0 }
 0x16d   : > { %v922_v51 = vpop.f32.mrb[64].mxu1 }
 0x16e   : > { %v1108_v47 = vpop.f32.mrb[64].mxu0  ;;  %v940_v53 = vadd.f32 %v922_v51, %v3152_v36  ;;  %v2396_v27 = vpop.f32.mrb[65].mxu1 }
 0x16f   : > { %v3186_v49 = vadd.f32 %v1108_v47, %v938_v40  ;;  %v2422_v21 = vpop.f32.mrb[65].mxu0  ;;  %v925_v60 = vpop.f32.mrb[66].mxu1 }
 0x170   : > { %v1111_v52 = vpop.f32.mrb[66].mxu0  ;;  %v2397_v26 = vpop.f32.mrb[67].mxu1 }
 0x171   : > { %v3189_v55 = vadd.f32 %v1111_v52, %v939_v46  ;;  %v2423_v59 = vpop.f32.mrb[67].mxu0 }
 0x175   : > { %v1213_v23 = vpop.f32.mrb[68].mxu1 }
 0x176   : > { %v1116_v61 = vpop.f32.mrb[68].mxu0  ;;  %v1267_v3 = vadd.f32 %v1213_v23, %v3156_v48  ;;  %v2432_v4 = vpop.f32.mrb[69].mxu1 }
 0x177   : > { %v3191_v62 = vadd.f32 %v1116_v61, %v940_v53  ;;  %v2426_v31 = vpop.f32.mrb[69].mxu0  ;;  %v1216_v1 = vpop.f32.mrb[70].mxu1 }
 0x178   : > { %v1119_v2 = vpop.f32.mrb[70].mxu0  ;;  %v1268_v11 = vadd.f32 %v1216_v1, %v3159_v56  ;;  %v2433_v36 = vpop.f32.mrb[71].mxu1 }
 0x179   : > { %v2427_v7 = vpop.f32.mrb[71].mxu0 }
 0x17d   : > { %v1221_v44 = vpop.f32.mrb[72].mxu1 }
 0x17e   : > { %v1399_v12 = vpop.f32.mrb[72].mxu0  ;;  %v1269_v18 = vadd.f32 %v1221_v44, %v3162_v63  ;;  %v2436_v6 = vpop.f32.mrb[73].mxu1 }
 0x17f   : > { %v3195_v13 = vadd.f32 %v1399_v12, %v1267_v3  ;;  %v2462_v14 = vpop.f32.mrb[73].mxu0  ;;  %v1224_v37 = vpop.f32.mrb[74].mxu1 }
 0x180   : > { %v1402_v17 = vpop.f32.mrb[74].mxu0  ;;  %v1270_v48 = vadd.f32 %v1224_v37, %v3165_v8  ;;  %v2437_v22 = vpop.f32.mrb[75].mxu1 }
 0x181   : > { %v3198_v19 = vadd.f32 %v1402_v17, %v1268_v11  ;;  %v2463_v50 = vpop.f32.mrb[75].mxu0 }
 0x185   : > { %v1229_v57 = vpop.f32.mrb[76].mxu1 }
 0x186   : > { %v1407_v24 = vpop.f32.mrb[76].mxu0  ;;  %v1271_v28 = vadd.f32 %v1229_v57, %v3168_v15  ;;  %v2440_v29 = vpop.f32.mrb[77].mxu1 }
 0x187   : > { %v3201_v10 = vadd.f32 %v1407_v24, %v1269_v18  ;;  %v2466_v56 = vpop.f32.mrb[77].mxu0  ;;  %v1232_v0 = vpop.f32.mrb[78].mxu1 }
 0x188   : > { %v1410_v41 = vpop.f32.mrb[78].mxu0  ;;  %v1272_v54 = vadd.f32 %v1232_v0, %v3171_v20  ;;  %v2441_v33 = vpop.f32.mrb[79].mxu1 }
 0x189   : > { %v3204_v30 = vadd.f32 %v1410_v41, %v1270_v48  ;;  %v2467_v63 = vpop.f32.mrb[79].mxu0 }
 0x18d   : > { %v1237_v9 = vpop.f32.mrb[80].mxu1 }
 0x18e   : > { %v1415_v34 = vpop.f32.mrb[80].mxu0  ;;  %v1273_v39 = vadd.f32 %v1237_v9, %v3174_v25  ;;  %v2444_v40 = vpop.f32.mrb[81].mxu1 }
 0x18f   : > { %v3207_v35 = vadd.f32 %v1415_v34, %v1271_v28  ;;  %v2470_v8 = vpop.f32.mrb[81].mxu0  ;;  %v1240_v16 = vpop.f32.mrb[82].mxu1  ;;  %v3244_v34 = vld [vmem:[%s3306_s2] ss:$0 sm:$0xff] }
 0x190   : > { %v1418_v58 = vpop.f32.mrb[82].mxu0  ;;  %v1274_v45 = vadd.f32 %v1240_v16, %v3177_v32  ;;  %v2445_v46 = vpop.f32.mrb[83].mxu1 }
 0x191   : > { %v3210_v42 = vadd.f32 %v1418_v58, %v1272_v54  ;;  %v2471_v15 = vpop.f32.mrb[83].mxu0  ;;  %v2178_v54 = vld [vmem:[%s3237_s22] sm:$0xff]  }
 0x192   : > { %v2179_v8 = vunpack.c.l.bf16 %v2178_v54 }
 0x195   : > { %v1245_v21 = vpop.f32.mrb[84].mxu1 }
 0x196   : > { %v1423_v5 = vpop.f32.mrb[84].mxu0  ;;  %v1275_v52 = vadd.f32 %v1245_v21, %v3180_v38  ;;  %v2448_v53 = vpop.f32.mrb[85].mxu1 }
 0x197   : > { %v3213_v47 = vadd.f32 %v1423_v5, %v1273_v39  ;;  %v2474_v20 = vpop.f32.mrb[85].mxu0  ;;  %v1248_v27 = vpop.f32.mrb[86].mxu1 }
 0x198   : > { %v1426_v51 = vpop.f32.mrb[86].mxu0  ;;  %v1276_v60 = vadd.f32 %v1248_v27, %v3183_v43  ;;  %v2449_v26 = vpop.f32.mrb[87].mxu1 }
 0x199   : > { %v3216_v59 = vadd.f32 %v1426_v51, %v1274_v45  ;;  %v2475_v25 = vpop.f32.mrb[87].mxu0  ;;  %v2180_v45 = vunpack.c.h.bf16 %v2178_v54 }
 0x19d   : > { %v1253_v23 = vpop.f32.mrb[88].mxu1 }
 0x19e   : > { %v1431_v61 = vpop.f32.mrb[88].mxu0  ;;  %v1277_v3 = vadd.f32 %v1253_v23, %v3186_v49  ;;  %v2452_v4 = vpop.f32.mrb[89].mxu1 }
 0x19f   : > { %v3219_v31 = vadd.f32 %v1431_v61, %v1275_v52  ;;  %v2478_v32 = vpop.f32.mrb[89].mxu0  ;;  %v1256_v1 = vpop.f32.mrb[90].mxu1 }
 0x1a0   : > { %v1434_v2 = vpop.f32.mrb[90].mxu0  ;;  %v1278_v11 = vadd.f32 %v1256_v1, %v3189_v55  ;;  %v2453_v36 = vpop.f32.mrb[91].mxu1 }
 0x1a1   : > { %v3222_v7 = vadd.f32 %v1434_v2, %v1276_v60  ;;  %v2479_v38 = vpop.f32.mrb[91].mxu0 }
 0x1a5   : > { %v1261_v44 = vpop.f32.mrb[92].mxu1 }
 0x1a6   : > { %v1439_v12 = vpop.f32.mrb[92].mxu0  ;;  %v1279_v18 = vadd.f32 %v1261_v44, %v3191_v62  ;;  %v2456_v50 = vpop.f32.mrb[93].mxu1 }
 0x1a7   : > { %v3225_v43 = vadd.f32 %v1439_v12, %v1277_v3  ;;  %v2482_v14 = vpop.f32.mrb[93].mxu0  ;;  %v1264_v37 = vpop.f32.mrb[94].mxu1 }
 0x1a8   : > { %v1442_v17 = vpop.f32.mrb[94].mxu0  ;;  %v2457_v48 = vpop.f32.mrb[95].mxu1 }
 0x1a9   : > { %v3228_v6 = vadd.f32 %v1442_v17, %v1278_v11  ;;  %v2483_v49 = vpop.f32.mrb[95].mxu0 }
 0x1ad   : > { %v1638_v56 = vpop.f32.mrb[96].mxu1 }
 0x1ae   : > { %v1447_v22 = vpop.f32.mrb[96].mxu0  ;;  %v1692_v41 = vadd.f32 %v1638_v56, %v3195_v13  ;;  %v2492_v28 = vpop.f32.mrb[97].mxu1 }
 0x1af   : > { %v3231_v24 = vadd.f32 %v1447_v22, %v1279_v18  ;;  %v2486_v55 = vpop.f32.mrb[97].mxu0  ;;  %v1641_v62 = vpop.f32.mrb[98].mxu1  ;;  %v2202_v18 = vld [vmem:[%s3237_s22 + $0x10] sm:$0xff]  }
 0x1b0   : > { %v1450_v57 = vpop.f32.mrb[98].mxu0  ;;  %v1693_v63 = vadd.f32 %v1641_v62, %v3198_v19  ;;  %v2493_v0 = vpop.f32.mrb[99].mxu1  ;;  %v2187_v22 = vunpack.c.l.bf16 %v2202_v18  ;;  %v2188_v62 = vunpack.c.h.bf16 %v2202_v18 }
 0x1b1   : > { %v2487_v29 = vpop.f32.mrb[99].mxu0 }
 0x1b5   : > { %v1646_v58 = vpop.f32.mrb[100].mxu1 }
 0x1b6   : > { %v1783_v33 = vpop.f32.mrb[100].mxu0  ;;  %v1694_v40 = vadd.f32 %v1646_v58, %v3201_v10  ;;  %v2496_v19 = vpop.f32.mrb[101].mxu1  ;;  %v2201_v10 = vld [vmem:[%s3237_s22 + $0x8] sm:$0xff]  }
 0x1b7   : > { %v1837_v13 = vadd.f32 %v1783_v33, %v1692_v41  ;;  %v2522_v9 = vpop.f32.mrb[101].mxu0  ;;  %v1649_v5 = vpop.f32.mrb[102].mxu1  ;;  %v2183_v61 = vunpack.c.l.bf16 %v2201_v10  ;;  %v2184_v1 = vunpack.c.h.bf16 %v2201_v10 }
 0x1b8   : > { %v1786_v39 = vpop.f32.mrb[102].mxu0  ;;  %v1695_v21 = vadd.f32 %v1649_v5, %v3204_v30  ;;  %v2497_v52 = vpop.f32.mrb[103].mxu1  ;;  %v2203_v9 = vld [vmem:[%s3237_s22 + $0x18] sm:$0xff]  }
 0x1b9   : > { %v1857_v15 = vadd.f32 %v3244_v34, %v1837_v13  ;;  %v1838_v16 = vadd.f32 %v1786_v39, %v1693_v63  ;;  %v2523_v46 = vpop.f32.mrb[103].mxu0  ;;  %v2191_v19 = vunpack.c.l.bf16 %v2203_v9 }
 0x1bb   : > { %v1896_v20 = vadd.f32 %v2179_v8, %v1857_v15  ;;  %v1858_v51 = vadd.f32 %v3244_v34, %v1838_v16 }
 0x1bd   : > { %v1909_v53 = vmax.f32 %v1896_v20, 0.0  ;;  %v1897_v25 = vadd.f32 %v2180_v45, %v1858_v51  ;;  %v1654_v32 = vpop.f32.mrb[104].mxu1  ;;  %v2192_v51 = vunpack.c.h.bf16 %v2203_v9  ;;  %v1882_v9 = vld [vmem:[%s3237_s22 + $0x30] sm:$0x3] }
 0x1be   : > { %v1791_v27 = vpop.f32.mrb[104].mxu0  ;;  %v1696_v2 = vadd.f32 %v1654_v32, %v3207_v35  ;;  %v2500_v4 = vpop.f32.mrb[105].mxu1 }
 0x1bf   : > { %1922 = vst [vmem:[%s3254_s15] sm:$0xff] %v1909_v53  ;;  %v1910_v60 = vmax.f32 %v1897_v25, 0.0  ;;  %v1839_v26 = vadd.f32 %v1791_v27, %v1694_v40  ;;  %v2526_v30 = vpop.f32.mrb[105].mxu0  ;;  %v1657_v36 = vpop.f32.mrb[106].mxu1 }
 0x1c0   : > { %v1794_v23 = vpop.f32.mrb[106].mxu0  ;;  %v1697_v14 = vadd.f32 %v1657_v36, %v3210_v42  ;;  %v2501_v17 = vpop.f32.mrb[107].mxu1 }
 0x1c1   : > { %1923 = vst [vmem:[%s3254_s15 + $0x8] sm:$0xff] %v1910_v60  ;;  %v1859_v3 = vadd.f32 %v3244_v34, %v1839_v26  ;;  %v1840_v38 = vadd.f32 %v1794_v23, %v1695_v21  ;;  %v2527_v11 = vpop.f32.mrb[107].mxu0  ;;  %v2204_v26 = vld [vmem:[%s3237_s22 + $0x20] sm:$0xff]  }
 0x1c3   : > { %v1898_v12 = vadd.f32 %v2183_v61, %v1859_v3  ;;  %v1860_v44 = vadd.f32 %v3244_v34, %v1840_v38 }
 0x1c5   : > { %v1911_v49 = vmax.f32 %v1898_v12, 0.0  ;;  %v1899_v50 = vadd.f32 %v2184_v1, %v1860_v44  ;;  %v1662_v56 = vpop.f32.mrb[108].mxu1  ;;  %v2196_v12 = vunpack.c.h.bf16 %v2204_v26 }
 0x1c6   : > { %v1799_v37 = vpop.f32.mrb[108].mxu0  ;;  %v1698_v41 = vadd.f32 %v1662_v56, %v3213_v47  ;;  %v2504_v28 = vpop.f32.mrb[109].mxu1 }
 0x1c7   : > { %1924 = vst [vmem:[%s3254_s15 + $0x10] sm:$0xff] %v1911_v49  ;;  %v1912_v35 = vmax.f32 %v1899_v50, 0.0  ;;  %v1841_v48 = vadd.f32 %v1799_v37, %v1696_v2  ;;  %v2530_v55 = vpop.f32.mrb[109].mxu0  ;;  %v1665_v0 = vpop.f32.mrb[110].mxu1  ;;  %v2195_v2 = vunpack.c.l.bf16 %v2204_v26  ;;  %v2205_v37 = vld [vmem:[%s3237_s22 + $0x28] sm:$0xff]  }
 0x1c8   : > { %v1802_v57 = vpop.f32.mrb[110].mxu0  ;;  %v1699_v33 = vadd.f32 %v1665_v0, %v3216_v59  ;;  %v2505_v8 = vpop.f32.mrb[111].mxu1  ;;  %v2199_v56 = vunpack.c.l.bf16 %v2205_v37 }
 0x1c9   : > { %1925 = vst [vmem:[%s3254_s15 + $0x18] sm:$0xff] %v1912_v35  ;;  %v1861_v42 = vadd.f32 %v3244_v34, %v1841_v48  ;;  %v1842_v29 = vadd.f32 %v1802_v57, %v1697_v14  ;;  %v2531_v63 = vpop.f32.mrb[111].mxu0 }
 0x1cb   : > { %v1900_v54 = vadd.f32 %v2187_v22, %v1861_v42  ;;  %v1862_v13 = vadd.f32 %v3244_v34, %v1842_v29 }
 0x1cd   : > { %v1913_v58 = vmax.f32 %v1900_v54, 0.0  ;;  %v1901_v39 = vadd.f32 %v2188_v62, %v1862_v13  ;;  %v1670_v45 = vpop.f32.mrb[112].mxu1  ;;  %v2200_v62 = vunpack.c.h.bf16 %v2205_v37 }
 0x1ce   : > { %v1807_v40 = vpop.f32.mrb[112].mxu0  ;;  %v1700_v5 = vadd.f32 %v1670_v45, %v3219_v31  ;;  %v2508_v20 = vpop.f32.mrb[113].mxu1 }
 0x1cf   : > { %1926 = vst [vmem:[%s3254_s15 + $0x20] sm:$0xff] %v1913_v58  ;;  %v1914_v47 = vmax.f32 %v1901_v39, 0.0  ;;  %v1843_v15 = vadd.f32 %v1807_v40, %v1698_v41  ;;  %v2534_v16 = vpop.f32.mrb[113].mxu0  ;;  %v1673_v10 = vpop.f32.mrb[114].mxu1 }
 0x1d0   : > { %v1810_v46 = vpop.f32.mrb[114].mxu0  ;;  %v1701_v25 = vadd.f32 %v1673_v10, %v3222_v7  ;;  %v2509_v60 = vpop.f32.mrb[115].mxu1 }
 0x1d1   : > { %1927 = vst [vmem:[%s3254_s15 + $0x28] sm:$0xff] %v1914_v47  ;;  %v1863_v59 = vadd.f32 %v3244_v34, %v1843_v15  ;;  %v1844_v21 = vadd.f32 %v1810_v46, %v1699_v33  ;;  %v2535_v52 = vpop.f32.mrb[115].mxu0  ;;  %v1895_v15 = vunpack.c.l.bf16 %v1882_v9 }
 0x1d3   : > { %v1902_v53 = vadd.f32 %v2191_v19, %v1863_v59  ;;  %v1864_v27 = vadd.f32 %v3244_v34, %v1844_v21 }
 0x1d5   : > { %v1915_v61 = vmax.f32 %v1902_v53, 0.0  ;;  %v1903_v30 = vadd.f32 %v2192_v51, %v1864_v27  ;;  %v1678_v4 = vpop.f32.mrb[116].mxu1 }
 0x1d6   : > { %v1815_v32 = vpop.f32.mrb[116].mxu0  ;;  %v1702_v1 = vadd.f32 %v1678_v4, %v3225_v43  ;;  %v2512_v11 = vpop.f32.mrb[117].mxu1 }
 0x1d7   : > { %1928 = vst [vmem:[%s3254_s15 + $0x30] sm:$0xff] %v1915_v61  ;;  %v1916_v31 = vmax.f32 %v1903_v30, 0.0  ;;  %v1845_v23 = vadd.f32 %v1815_v32, %v1700_v5  ;;  %v2538_v3 = vpop.f32.mrb[117].mxu0  ;;  %v1681_v44 = vpop.f32.mrb[118].mxu1 }
 0x1d8   : > { %v1818_v38 = vpop.f32.mrb[118].mxu0  ;;  %v1703_v18 = vadd.f32 %v1681_v44, %v3228_v6  ;;  %v2513_v50 = vpop.f32.mrb[119].mxu1 }
 0x1d9   : > { %1929 = vst [vmem:[%s3254_s15 + $0x38] sm:$0xff] %v1916_v31  ;;  %v1865_v7 = vadd.f32 %v3244_v34, %v1845_v23  ;;  %v1846_v36 = vadd.f32 %v1818_v38, %v1701_v25  ;;  %v2539_v14 = vpop.f32.mrb[119].mxu0 }
 0x1db   : > { %v1904_v17 = vadd.f32 %v2195_v2, %v1865_v7  ;;  %v1866_v49 = vadd.f32 %v3244_v34, %v1846_v36 }
 0x1dd   : > { %v1917_v35 = vmax.f32 %v1904_v17, 0.0  ;;  %v1905_v48 = vadd.f32 %v2196_v12, %v1866_v49  ;;  %v1686_v41 = vpop.f32.mrb[120].mxu1 }
 0x1de   : > { %v1823_v22 = vpop.f32.mrb[120].mxu0  ;;  %v1704_v28 = vadd.f32 %v1686_v41, %v3231_v24  ;;  %v2516_v0 = vpop.f32.mrb[121].mxu1 }
 0x1df   : > { %1930 = vst [vmem:[%s3254_s15 + $0x40] sm:$0xff] %v1917_v35  ;;  %v1918_v43 = vmax.f32 %v1905_v48, 0.0  ;;  %v1847_v55 = vadd.f32 %v1823_v22, %v1702_v1  ;;  %v2542_v57 = vpop.f32.mrb[121].mxu0  ;;  %v1689_v54 = vpop.f32.mrb[122].mxu1 }
 0x1e0   : > { %v1826_v42 = vpop.f32.mrb[122].mxu0  ;;  %v2517_v8 = vpop.f32.mrb[123].mxu1 }
 0x1e1   : > { %1931 = vst [vmem:[%s3254_s15 + $0x48] sm:$0xff] %v1918_v43  ;;  %v1867_v6 = vadd.f32 %v3244_v34, %v1847_v55  ;;  %v1848_v29 = vadd.f32 %v1826_v42, %v1703_v18  ;;  %v2543_v63 = vpop.f32.mrb[123].mxu0 }
 0x1e3   : > { %v1906_v33 = vadd.f32 %v2199_v56, %v1867_v6  ;;  %v1868_v13 = vadd.f32 %v3244_v34, %v1848_v29 }
 0x1e5   : > { %v1919_v58 = vmax.f32 %v1906_v33, 0.0  ;;  %v1907_v39 = vadd.f32 %v2200_v62, %v1868_v13 }
 0x1e6   : > { %v1831_v40 = vpop.f32.mrb[124].mxu0 }
 0x1e7   : > { %1932 = vst [vmem:[%s3254_s15 + $0x50] sm:$0xff] %v1919_v58  ;;  %v1920_v47 = vmax.f32 %v1907_v39, 0.0  ;;  %v1849_v24 = vadd.f32 %v1831_v40, %v1704_v28  ;;  %v2546_v19 = vpop.f32.mrb[125].mxu0 }
 0x1e8   : > { %v1834_v16 = vpop.f32.mrb[126].mxu0 }
 0x1e9   : > { %1933 = vst [vmem:[%s3254_s15 + $0x58] sm:$0xff] %v1920_v47  ;;  %v1869_v45 = vadd.f32 %v3244_v34, %v1849_v24  ;;  %v2547_v46 = vpop.f32.mrb[127].mxu0 }
 0x1eb   : > { %v1908_v5 = vadd.f32 %v1895_v15, %v1869_v45 }
 0x1ed   : > { %v1921_v59 = vmax.f32 %v1908_v5, 0.0 }
 0x1ef   : > { %1934 = vst [vmem:[%s3254_s15 + $0x60] sm:$0xf] %v1921_v59 }
 0x1f0 PF: > { %s14_s17 = sadd.s32 1, %s2633_s17   ;;  %s3309_s15 = smov %s2629_s16 }
 0x1f1   : > { %p11_p5 = scmp.ge.s32.totalorder %s14_s17, 4   ;;  %s3310_s16 = smov %s3312_s18 }
 0x1f3   :  { %13 = sbr.rel (!%p11_p5) target bundleno = 2 (0x2), region = 83 }

</bundles_post_ra>
